<compile_context>
chip_gen: v7x
topology: tpu7x:2x2x1
jax: 0.10.0
libtpu: 0.0.40
codegen_flags: <defaults>
</compile_context>

<pallas_src>
import functools
import numpy as np
import jax
import jax.numpy as jnp
from jax.experimental import pallas as pl
from jax.experimental.pallas import tpu as pltpu

_TILE_CAP = 1024                  # lane-tile cap (review: 512-2048)
_VMEM_LIMIT = 32 * 1024 * 1024    # safe on v5e/v6e/v7x


# ----------------------------------------------------------------------------
# tiling helpers
# ----------------------------------------------------------------------------
def _round_up(n, m):
    return ((n + m - 1) // m) * m


def _pick_tile(n, cap=_TILE_CAP):
    """Return (tile, padded_n): padded_n % 128 == 0 and tile | padded_n."""
    n_pad = _round_up(n, 128)
    tile = 128
    for cand in range(min(cap, n_pad), 0, -128):
        if n_pad % cand == 0:
            tile = cand
            break
    return tile, n_pad


def _pad_last(x, n_pad):
    n = x.shape[-1]
    if n == n_pad:
        return x
    cfg = [(0, 0)] * (x.ndim - 1) + [(0, n_pad - n)]
    return jnp.pad(x, cfg)


# ----------------------------------------------------------------------------
# Kernel 1: channel-major 1x1x1 conv  out = W @ x + b  (optional fused
#           BN-affine + ReLU prologue applied to the input tile)
# ----------------------------------------------------------------------------
def _conv_kernel_plain(x_ref, w_ref, b_ref, o_ref):
    acc = jnp.dot(w_ref[...], x_ref[0], preferred_element_type=jnp.float32)
    o_ref[0] = (acc + b_ref[...]).astype(o_ref.dtype)


def _conv_kernel_bnrelu(x_ref, w_ref, b_ref, a_ref, c_ref, o_ref):
    xin = x_ref[0].astype(jnp.float32) * a_ref[...] + c_ref[...]
    xin = jnp.maximum(xin, 0.0).astype(jnp.bfloat16)
    acc = jnp.dot(w_ref[...], xin, preferred_element_type=jnp.float32)
    o_ref[0] = (acc + b_ref[...]).astype(o_ref.dtype)


def pallas_conv1x1(x_bcs, w, b, scale=None, shift=None, relu_prologue=False):
    """x_bcs: (B, Cin, S) ; w: (Cout, Cin) ; b: (Cout,) -> (B, Cout, S) f32."""
    B, Cin, S = x_bcs.shape
    Cout = w.shape[0]
    tn, S_pad = _pick_tile(S)
    xp = _pad_last(x_bcs, S_pad).astype(jnp.bfloat16)
    wb = w.astype(jnp.bfloat16)
    b2 = b.reshape(Cout, 1).astype(jnp.float32)

    in_specs = [
        pl.BlockSpec((1, Cin, tn), lambda bi, ti: (bi, 0, ti)),
        pl.BlockSpec((Cout, Cin), lambda bi, ti: (0, 0)),
        pl.BlockSpec((Cout, 1), lambda bi, ti: (0, 0)),
    ]
    if relu_prologue:
        kernel = _conv_kernel_bnrelu
        in_specs += [
            pl.BlockSpec((Cin, 1), lambda bi, ti: (0, 0)),
            pl.BlockSpec((Cin, 1), lambda bi, ti: (0, 0)),
        ]
        args = (xp, wb, b2,
                scale.reshape(Cin, 1).astype(jnp.float32),
                shift.reshape(Cin, 1).astype(jnp.float32))
    else:
        kernel = _conv_kernel_plain
        args = (xp, wb, b2)

    out = pl.pallas_call(
        kernel,
        out_shape=jax.ShapeDtypeStruct((B, Cout, S_pad), jnp.float32),
        grid=(B, S_pad // tn),
        in_specs=in_specs,
        out_specs=pl.BlockSpec((1, Cout, tn), lambda bi, ti: (bi, 0, ti)),
        compiler_params=pltpu.CompilerParams(
            dimension_semantics=("parallel", "parallel"),
            vmem_limit_bytes=_VMEM_LIMIT),
    )(*args)
    return out[..., :S]


# ----------------------------------------------------------------------------
# Kernel 2: window attention (per-head logits, softmax over K2, weighted V)
# ----------------------------------------------------------------------------
def _make_attn_kernel(scaling):
    def kernel(q_ref, k_ref, v_ref, dpe_ref, o_ref):
        q = q_ref[0] * scaling                    # (head, hd, tn)
        k = k_ref[0]                              # (K2, head, hd, tn)
        v = v_ref[0]                              # (K2, head, hd, tn)
        dpe = dpe_ref[...]                        # (K2, head, hd, tn)
        prod = q[None] * (k + dpe)                # (K2, head, hd, tn)
        logits = jnp.sum(prod, axis=2, keepdims=True)     # (K2, head, 1, tn)
        m = jnp.max(logits, axis=0, keepdims=True)        # (1, head, 1, tn)
        e = jnp.exp(logits - m)
        denom = jnp.sum(e, axis=0, keepdims=True)         # (1, head, 1, tn)
        att = e * pl.reciprocal(denom, approx=True)       # (K2, head, 1, tn)
        out = jnp.sum(att * v, axis=0)                    # (head, hd, tn)
        o_ref[0] = out.astype(o_ref.dtype)
    return kernel


def pallas_window_attention(q_bhds, k_unf, v_unf, dpe, scaling):
    """q: (B, head, hd, S); k/v: (B, K2, head, hd, S); dpe: (K2, head, hd, S)."""
    B, Hh, Dd, S = q_bhds.shape
    K2 = k_unf.shape[1]
    tn, S_pad = _pick_tile(S)
    qp = _pad_last(q_bhds, S_pad)
    kp = _pad_last(k_unf, S_pad)
    vp = _pad_last(v_unf, S_pad)
    dp = _pad_last(dpe, S_pad)
    out = pl.pallas_call(
        _make_attn_kernel(scaling),
        out_shape=jax.ShapeDtypeStruct((B, Hh, Dd, S_pad), jnp.float32),
        grid=(B, S_pad // tn),
        in_specs=[
            pl.BlockSpec((1, Hh, Dd, tn), lambda bi, ti: (bi, 0, 0, ti)),
            pl.BlockSpec((1, K2, Hh, Dd, tn), lambda bi, ti: (bi, 0, 0, 0, ti)),
            pl.BlockSpec((1, K2, Hh, Dd, tn), lambda bi, ti: (bi, 0, 0, 0, ti)),
            pl.BlockSpec((K2, Hh, Dd, tn), lambda bi, ti: (0, 0, 0, ti)),
        ],
        out_specs=pl.BlockSpec((1, Hh, Dd, tn), lambda bi, ti: (bi, 0, 0, ti)),
        compiler_params=pltpu.CompilerParams(
            dimension_semantics=("parallel", "parallel"),
            vmem_limit_bytes=_VMEM_LIMIT),
    )(qp, kp, vp, dp)
    return out[..., :S]


# ----------------------------------------------------------------------------
# Kernel 3: grouped dep_conv (im2col rows per group) + fused rate-combine:
#           out = rate1*att + rate2*(Wg @ patches_g)
# (rates are pre-folded into att / Wg outside, so the kernel is a pure FMA.)
# ----------------------------------------------------------------------------
def _depconv_kernel(p_ref, w_ref, a_ref, o_ref):
    conv = jnp.dot(w_ref[0], p_ref[0, 0], preferred_element_type=jnp.float32)
    o_ref[0, 0] = (a_ref[0, 0] + conv).astype(o_ref.dtype)


def pallas_depconv_combine(patches, wg, att_r):
    """patches: (B, G, R, S); wg: (G, Hh, R); att_r: (B, G, Hh, S) -> (B, G, Hh, S)."""
    B, G, R, S = patches.shape
    Hh = wg.shape[1]
    tn, S_pad = _pick_tile(S)
    pp = _pad_last(patches, S_pad).astype(jnp.bfloat16)
    ap = _pad_last(att_r, S_pad)
    out = pl.pallas_call(
        _depconv_kernel,
        out_shape=jax.ShapeDtypeStruct((B, G, Hh, S_pad), jnp.float32),
        grid=(B, G, S_pad // tn),
        in_specs=[
            pl.BlockSpec((1, 1, R, tn), lambda bi, g, ti: (bi, g, 0, ti)),
            pl.BlockSpec((1, Hh, R), lambda bi, g, ti: (g, 0, 0)),
            pl.BlockSpec((1, 1, Hh, tn), lambda bi, g, ti: (bi, g, 0, ti)),
        ],
        out_specs=pl.BlockSpec((1, 1, Hh, tn), lambda bi, g, ti: (bi, g, 0, ti)),
        compiler_params=pltpu.CompilerParams(
            dimension_semantics=("parallel", "parallel", "parallel"),
            vmem_limit_bytes=_VMEM_LIMIT),
    )(pp, wg.astype(jnp.bfloat16), ap)
    return out[..., :S]


# ----------------------------------------------------------------------------
# Kernel 4: fused bn3-affine + residual add + ReLU epilogue
# ----------------------------------------------------------------------------
def _bn_add_relu_kernel(y_ref, r_ref, a_ref, c_ref, o_ref):
    o_ref[0] = jnp.maximum(y_ref[0] * a_ref[...] + c_ref[...] + r_ref[0], 0.0)


def pallas_bn_add_relu(y, res, a, c):
    B, C, S = y.shape
    tn, S_pad = _pick_tile(S)
    yp = _pad_last(y, S_pad)
    rp = _pad_last(res, S_pad)
    out = pl.pallas_call(
        _bn_add_relu_kernel,
        out_shape=jax.ShapeDtypeStruct((B, C, S_pad), jnp.float32),
        grid=(B, S_pad // tn),
        in_specs=[
            pl.BlockSpec((1, C, tn), lambda bi, ti: (bi, 0, ti)),
            pl.BlockSpec((1, C, tn), lambda bi, ti: (bi, 0, ti)),
            pl.BlockSpec((C, 1), lambda bi, ti: (0, 0)),
            pl.BlockSpec((C, 1), lambda bi, ti: (0, 0)),
        ],
        out_specs=pl.BlockSpec((1, C, tn), lambda bi, ti: (bi, 0, ti)),
        compiler_params=pltpu.CompilerParams(
            dimension_semantics=("parallel", "parallel"),
            vmem_limit_bytes=_VMEM_LIMIT),
    )(yp, rp, a.reshape(C, 1).astype(jnp.float32), c.reshape(C, 1).astype(jnp.float32))
    return out[..., :S]


# ----------------------------------------------------------------------------
# JAX glue: training-mode BN statistics folded into a per-channel affine
# ----------------------------------------------------------------------------
def bn_stats_affine(y, gamma, beta, eps=1e-5):
    """y: (B, C, S).  Returns (a, c) s.t. BN(y) == a*y + c (training stats)."""
    mean = jnp.mean(y, axis=(0, 2))
    var = jnp.mean((y - mean[None, :, None]) ** 2, axis=(0, 2))
    a = gamma / jnp.sqrt(var + eps)
    c = beta - mean * a
    return a, c


# ----------------------------------------------------------------------------
# ACmix forward
# ----------------------------------------------------------------------------
def acmix_forward(x_bcs, dims, p, head, kernel_att, kernel_conv, stride_, dilation,
                  prologue_scale=None, prologue_shift=None):
    # TODO(synk): stride > 1 path (torch `stride()` slicing + unfold stride) not implemented.
    assert stride_ == 1
    c, h, w = dims
    b, in_planes, S = x_bcs.shape
    out_planes = p['conv1_w'].shape[0]
    hd = out_planes // head
    scaling = float(hd) ** (-0.5)
    K2 = kernel_att * kernel_att
    kc2 = kernel_conv * kernel_conv
    K3 = kernel_conv ** 3

    # ---- fused q/k/v 1x1x1 conv (bn1+relu prologue folded in) ----
    w_qkv = jnp.concatenate([p['conv1_w'].reshape(out_planes, in_planes),
                             p['conv2_w'].reshape(out_planes, in_planes),
                             p['conv3_w'].reshape(out_planes, in_planes)], axis=0)
    b_qkv = jnp.concatenate([p['conv1_b'], p['conv2_b'], p['conv3_b']], axis=0)
    qkv = pallas_conv1x1(x_bcs, w_qkv, b_qkv,
                         scale=prologue_scale, shift=prologue_shift,
                         relu_prologue=prologue_scale is not None)
    q = qkv[:, :out_planes]
    k = qkv[:, out_planes:2 * out_planes]
    v = qkv[:, 2 * out_planes:]

    # ---- position_3D + conv_p_3D (batch independent) ----
    loc_w = jnp.broadcast_to(jnp.linspace(-1.0, 1.0, w)[None, :], (h, w))
    loc_h = jnp.broadcast_to(jnp.linspace(-1.0, 1.0, h)[:, None], (h, w))
    loc = jnp.stack([jnp.broadcast_to(loc_w, (c, h, w)),
                     jnp.broadcast_to(loc_h, (c, h, w))], axis=0).reshape(1, 2, S)
    pe = pallas_conv1x1(loc.astype(jnp.float32),
                        p['conv_p_w'].reshape(hd, 2), p['conv_p_b'])      # (1, hd, S)

    # ---- attention branch ----
    pad = (dilation * (kernel_att - 1) + 1) // 2

    def unfold_view(t):
        # reflection pad H,W; per-depth-slice unfold; then reproduce the torch
        # `.view` raw reinterpretation to (n, hd, K2, c, h, w).
        n = t.shape[0]
        tp = jnp.pad(t, ((0, 0), (0, 0), (0, 0), (pad, pad), (pad, pad)), mode='reflect')
        wins = [tp[:, :, :, ki:ki + h, kj:kj + w]
                for ki in range(kernel_att) for kj in range(kernel_att)]
        U = jnp.stack(wins, axis=0)                    # (K2, n, hd, c, h, w)
        U = jnp.transpose(U, (3, 1, 2, 0, 4, 5))       # (c, n, hd, K2, h, w) == torch buffer order
        return U.reshape(n, hd, K2, c, h, w)

    k5 = k.reshape(b * head, hd, c, h, w)
    v5 = v.reshape(b * head, hd, c, h, w)
    pe5 = pe.reshape(1, hd, c, h, w)

    def to_attn_layout(u):     # (b*head, hd, K2, c, h, w) -> (b, K2, head, hd, S)
        return jnp.transpose(u.reshape(b, head, hd, K2, S), (0, 3, 1, 2, 4))

    kf = to_attn_layout(unfold_view(k5))
    vf = to_attn_layout(unfold_view(v5))

    rpe = unfold_view(pe5)                             # (1, hd, K2, c, h, w)
    dpe = pe5[:, :, None] - rpe                        # q_pe - unfold_rpe
    dpe = jnp.transpose(dpe.reshape(1, hd, K2, S), (0, 2, 1, 3))[0]       # (K2, hd, S)
    dpe = jnp.broadcast_to(dpe[:, None], (K2, head, hd, S))               # head-broadcast only

    q_attn = q.reshape(b, head, hd, S)
    out_att = pallas_window_attention(q_attn, kf, vf, dpe, scaling)       # (b, head, hd, S)
    # group-major (group=hd index, out-per-group=head index) view for the dep epilogue
    att_r = out_att.reshape(b, hd, head, S)

    # ---- convolution branch ----
    f_in = jnp.concatenate([q.reshape(b, head, hd * S),
                            k.reshape(b, head, hd * S),
                            v.reshape(b, head, hd * S)], axis=1)          # (b, 3*head, hd*S)
    f_all = pallas_conv1x1(f_in, p['fc_w'].reshape(kc2, 3 * head),
                           jnp.zeros((kc2,), jnp.float32))                # (b, kc2, hd*S)
    f_conv = jnp.transpose(f_all.reshape(b, kc2, hd, S), (0, 2, 1, 3))    # (b, hd, kc2, S)
    f_conv = f_conv.reshape(b, hd * kc2, c, h, w)

    # grouped 3x3x3 dep_conv_3D (groups=hd, padding=1, bias removed by init_rate_0)
    # TODO(synk): im2col shifts are still materialized in HBM; an in-kernel halo
    #             gather would cut this 27x traffic further.
    fp = jnp.pad(f_conv, ((0, 0), (0, 0), (1, 1), (1, 1), (1, 1)))
    shifts = [fp[:, :, dz:dz + c, dy:dy + h, dx:dx + w]
              for dz in range(kernel_conv)
              for dy in range(kernel_conv)
              for dx in range(kernel_conv)]
    patches = jnp.stack(shifts, axis=2)                # (b, hd*kc2, K3, c, h, w)
    patches = patches.reshape(b, hd, kc2 * K3, S)      # per-group im2col rows (ci*K3 + tap)
    wg = p['dep_w'].reshape(hd, head, kc2 * K3)        # (group, out-per-group, kc2*K3)

    # fold the learned mixing rates (tiny) so the dep kernel epilogue is a pure add
    att_scaled = att_r * p['rate1']
    wg_scaled = wg * p['rate2']

    out = pallas_depconv_combine(patches, wg_scaled, att_scaled)          # (b, hd, head, S)
    return out.reshape(b, out_planes, S)


# ----------------------------------------------------------------------------
# Bottleneck forward
# ----------------------------------------------------------------------------
def bottleneck_forward(x, params, head, k_att, k_conv):
    B, C0, D, H, W = x.shape
    S = D * H * W
    x_bcs = x.reshape(B, C0, S).astype(jnp.float32)

    width = params['c1_w'].shape[0]
    y1 = pallas_conv1x1(x_bcs, params['c1_w'].reshape(width, C0), params['c1_b'])

    # bn1 + relu folded as prologue into the fused q/k/v conv inside ACmix
    a1, c1 = bn_stats_affine(y1, params['bn1_g'], params['bn1_b'])
    acmix_out = acmix_forward(y1, (D, H, W), params['acmix'], head, k_att, k_conv,
                              1, 1, prologue_scale=a1, prologue_shift=c1)

    # bn2 + relu folded as prologue into conv3
    a2, c2 = bn_stats_affine(acmix_out, params['bn2_g'], params['bn2_b'])
    C4 = params['c3_w'].shape[0]
    y3 = pallas_conv1x1(acmix_out, params['c3_w'].reshape(C4, width), params['c3_b'],
                        scale=a2, shift=c2, relu_prologue=True)

    # bn3 affine + residual + relu (downsample is None -> inplanes == planes*4)
    a3, c3 = bn_stats_affine(y3, params['bn3_g'], params['bn3_b'])
    out = pallas_bn_add_relu(y3, x_bcs, a3, c3)
    return out.reshape(B, C4, D, H, W)


# ----------------------------------------------------------------------------
# Deterministic parameter construction
# ----------------------------------------------------------------------------
def init_params(key, inplanes, planes, head, k_att, k_conv):
    expansion = 4
    width = int(planes * (64 / 64.0)) * 1
    head_dim = width // head
    kc2 = k_conv * k_conv
    keys = jax.random.split(key, 16)

    def nrm(kk, shape, scale=0.1):
        return (scale * jax.random.normal(kk, shape)).astype(jnp.float32)

    p = {}
    p['c1_w'] = nrm(keys[0], (width, inplanes, 1, 1, 1))
    p['c1_b'] = nrm(keys[1], (width,))
    p['bn1_g'] = jnp.ones((width,), jnp.float32)
    p['bn1_b'] = jnp.zeros((width,), jnp.float32)

    ac = {}
    ac['conv1_w'] = nrm(keys[2], (width, width, 1, 1, 1)); ac['conv1_b'] = nrm(keys[3], (width,))
    ac['conv2_w'] = nrm(keys[4], (width, width, 1, 1, 1)); ac['conv2_b'] = nrm(keys[5], (width,))
    ac['conv3_w'] = nrm(keys[6], (width, width, 1, 1, 1)); ac['conv3_b'] = nrm(keys[7], (width,))
    ac['conv_p_w'] = nrm(keys[8], (head_dim, 2, 1, 1, 1)); ac['conv_p_b'] = nrm(keys[9], (head_dim,))
    ac['fc_w'] = nrm(keys[10], (kc2, 3 * head, 1, 1, 1))
    ac['dep_w'] = nrm(keys[11], (width, kc2, k_conv, k_conv, k_conv),
                      scale=float(np.sqrt(2.0 / (width * k_conv ** 3))))   # kaiming-style
    ac['rate1'] = jnp.float32(0.5)   # init_rate_half
    ac['rate2'] = jnp.float32(0.5)
    p['acmix'] = ac

    p['bn2_g'] = jnp.ones((width,), jnp.float32)
    p['bn2_b'] = jnp.zeros((width,), jnp.float32)
    p['c3_w'] = nrm(keys[12], (planes * expansion, width, 1, 1, 1))
    p['c3_b'] = nrm(keys[13], (planes * expansion,))
    p['bn3_g'] = jnp.ones((planes * expansion,), jnp.float32)
    p['bn3_b'] = jnp.zeros((planes * expansion,), jnp.float32)
    return p


if __name__ == "__main__":
    # Small shapes: batch=2, inplanes=16, planes=4 (-> width=4, planes*4=16 so
    # the residual add works without a downsample), head=2, k_att=3, k_conv=3,
    # depth=4, H=W=8.
    b, inplanes, planes = 2, 16, 4
    head, k_att, k_conv = 2, 3, 3
    depth, H, W = 4, 8, 8

    key = jax.random.PRNGKey(0)
    kx, kp = jax.random.split(key)
    x = jax.random.normal(kx, (b, inplanes, depth, H, W), dtype=jnp.float32)
    params = init_params(kp, inplanes, planes, head, k_att, k_conv)

    fwd = jax.jit(functools.partial(bottleneck_forward,
                                    head=head, k_att=k_att, k_conv=k_conv))
    out = fwd(x, params)
    out = jax.block_until_ready(out)
    assert out.shape == (b, planes * 4, depth, H, W)
    assert bool(jnp.all(jnp.isfinite(out)))
    print("KERNEL_OK")
</pallas_src>

<mosaic_0001>
module attributes {stable_mosaic.version = 11 : i64} {
  func.func @_conv_kernel_plain(%arg0: i32, %arg1: i32, %arg2: memref<1x2x256xbf16, #tpu.memory_space<vmem>>, %arg3: memref<2x2xbf16, #tpu.memory_space<vmem>>, %arg4: memref<2x1xf32, #tpu.memory_space<vmem>>, %arg5: memref<1x2x256xf32, #tpu.memory_space<vmem>>) attributes {dimension_semantics = [#tpu.dimension_semantics<parallel>, #tpu.dimension_semantics<parallel>], iteration_bounds = array<i64: 1, 1>, scalar_prefetch = 0 : i64, scratch_operands = 0 : i64, tpu.core_type = #tpu.core_type<tc>, window_params = [{transform_indices = @transform_0, window_bounds = array<i64: 1, 2, 256>}, {pipeline_mode = #tpu.pipeline_mode<synchronous>, transform_indices = @transform_1, window_bounds = array<i64: 2, 2>}, {pipeline_mode = #tpu.pipeline_mode<synchronous>, transform_indices = @transform_2, window_bounds = array<i64: 2, 1>}, {transform_indices = @transform_3, window_bounds = array<i64: 1, 2, 256>}]} {
    %c0 = arith.constant 0 : index
    %c0_0 = arith.constant 0 : index
    %0 = vector.load %arg3[%c0, %c0_0] : memref<2x2xbf16, #tpu.memory_space<vmem>>, vector<2x2xbf16>
    %c0_1 = arith.constant 0 : index
    %c0_2 = arith.constant 0 : index
    %c0_3 = arith.constant 0 : index
    %1 = vector.load %arg2[%c0_1, %c0_2, %c0_3] : memref<1x2x256xbf16, #tpu.memory_space<vmem>>, vector<1x2x256xbf16>
    %2 = vector.shape_cast %1 : vector<1x2x256xbf16> to vector<2x256xbf16>
    %cst = arith.constant dense<0.000000e+00> : vector<2x256xf32>
    %3 = tpu.matmul %0, %2, %cst {dimension_numbers = #tpu.dot_dimension_numbers<[1], [0], [0], [1], [0, 0, 1, 1], [], []>} : vector<2x2xbf16>, vector<2x256xbf16>, vector<2x256xf32> -> vector<2x256xf32>
    %c0_4 = arith.constant 0 : index
    %c0_5 = arith.constant 0 : index
    %4 = vector.load %arg4[%c0_4, %c0_5] : memref<2x1xf32, #tpu.memory_space<vmem>>, vector<2x1xf32>
    %5 = vector.broadcast %4 : vector<2x1xf32> to vector<2x256xf32>
    %6 = arith.addf %3, %5 : vector<2x256xf32>
    %c0_6 = arith.constant 0 : index
    %c0_7 = arith.constant 0 : index
    %c0_8 = arith.constant 0 : index
    %7 = vector.load %arg5[%c0_6, %c0_7, %c0_8] : memref<1x2x256xf32, #tpu.memory_space<vmem>>, vector<1x2x256xf32>
    %8 = vector.shape_cast %7 : vector<1x2x256xf32> to vector<2x256xf32>
    %9 = vector.shape_cast %6 : vector<2x256xf32> to vector<1x2x256xf32>
    tpu.vector_store %arg5[%c0_6, %c0_7, %c0_8], %9 {strides = array<i32>} : memref<1x2x256xf32, #tpu.memory_space<vmem>>, vector<1x2x256xf32>,
    return
  }
  func.func @transform_0(%arg0: i32, %arg1: i32) -> (i32, i32, i32) {
    %c0_i32 = arith.constant 0 : i32
    %c0_i32_0 = arith.constant 0 : i32
    return %arg0, %c0_i32, %arg1 : i32, i32, i32
  }
  func.func @transform_1(%arg0: i32, %arg1: i32) -> (i32, i32) {
    %c0_i32 = arith.constant 0 : i32
    %c0_i32_0 = arith.constant 0 : i32
    %c0_i32_1 = arith.constant 0 : i32
    return %c0_i32, %c0_i32_0 : i32, i32
  }
  func.func @transform_2(%arg0: i32, %arg1: i32) -> (i32, i32) {
    %c0_i32 = arith.constant 0 : i32
    %c0_i32_0 = arith.constant 0 : i32
    %c0_i32_1 = arith.constant 0 : i32
    return %c0_i32, %c0_i32_0 : i32, i32
  }
  func.func @transform_3(%arg0: i32, %arg1: i32) -> (i32, i32, i32) {
    %c0_i32 = arith.constant 0 : i32
    %c0_i32_0 = arith.constant 0 : i32
    return %arg0, %c0_i32, %arg1 : i32, i32, i32
  }
}

module attributes {stable_mosaic.version = 11 : i64} {
  func.func @_conv_kernel_plain(%arg0: i32, %arg1: i32, %arg2: memref<1x16x256xbf16, #tpu.memory_space<vmem>>, %arg3: memref<4x16xbf16, #tpu.memory_space<vmem>>, %arg4: memref<4x1xf32, #tpu.memory_space<vmem>>, %arg5: memref<1x4x256xf32, #tpu.memory_space<vmem>>) attributes {dimension_semantics = [#tpu.dimension_semantics<parallel>, #tpu.dimension_semantics<parallel>], iteration_bounds = array<i64: 2, 1>, scalar_prefetch = 0 : i64, scratch_operands = 0 : i64, tpu.core_type = #tpu.core_type<tc>, window_params = [{transform_indices = @transform_0, window_bounds = array<i64: 1, 16, 256>}, {pipeline_mode = #tpu.pipeline_mode<synchronous>, transform_indices = @transform_1, window_bounds = array<i64: 4, 16>}, {pipeline_mode = #tpu.pipeline_mode<synchronous>, transform_indices = @transform_2, window_bounds = array<i64: 4, 1>}, {transform_indices = @transform_3, window_bounds = array<i64: 1, 4, 256>}]} {
    %c0 = arith.constant 0 : index
    %c0_0 = arith.constant 0 : index
    %0 = vector.load %arg3[%c0, %c0_0] : memref<4x16xbf16, #tpu.memory_space<vmem>>, vector<4x16xbf16>
    %c0_1 = arith.constant 0 : index
    %c0_2 = arith.constant 0 : index
    %c0_3 = arith.constant 0 : index
    %1 = vector.load %arg2[%c0_1, %c0_2, %c0_3] : memref<1x16x256xbf16, #tpu.memory_space<vmem>>, vector<1x16x256xbf16>
    %2 = vector.shape_cast %1 : vector<1x16x256xbf16> to vector<16x256xbf16>
    %cst = arith.constant dense<0.000000e+00> : vector<4x256xf32>
    %3 = tpu.matmul %0, %2, %cst {dimension_numbers = #tpu.dot_dimension_numbers<[1], [0], [0], [1], [0, 0, 1, 1], [], []>} : vector<4x16xbf16>, vector<16x256xbf16>, vector<4x256xf32> -> vector<4x256xf32>
    %c0_4 = arith.constant 0 : index
    %c0_5 = arith.constant 0 : index
    %4 = vector.load %arg4[%c0_4, %c0_5] : memref<4x1xf32, #tpu.memory_space<vmem>>, vector<4x1xf32>
    %5 = vector.broadcast %4 : vector<4x1xf32> to vector<4x256xf32>
    %6 = arith.addf %3, %5 : vector<4x256xf32>
    %c0_6 = arith.constant 0 : index
    %c0_7 = arith.constant 0 : index
    %c0_8 = arith.constant 0 : index
    %7 = vector.load %arg5[%c0_6, %c0_7, %c0_8] : memref<1x4x256xf32, #tpu.memory_space<vmem>>, vector<1x4x256xf32>
    %8 = vector.shape_cast %7 : vector<1x4x256xf32> to vector<4x256xf32>
    %9 = vector.shape_cast %6 : vector<4x256xf32> to vector<1x4x256xf32>
    tpu.vector_store %arg5[%c0_6, %c0_7, %c0_8], %9 {strides = array<i32>} : memref<1x4x256xf32, #tpu.memory_space<vmem>>, vector<1x4x256xf32>,
    return
  }
  func.func @transform_0(%arg0: i32, %arg1: i32) -> (i32, i32, i32) {
    %c0_i32 = arith.constant 0 : i32
    %c0_i32_0 = arith.constant 0 : i32
    return %arg0, %c0_i32, %arg1 : i32, i32, i32
  }
  func.func @transform_1(%arg0: i32, %arg1: i32) -> (i32, i32) {
    %c0_i32 = arith.constant 0 : i32
    %c0_i32_0 = arith.constant 0 : i32
    %c0_i32_1 = arith.constant 0 : i32
    return %c0_i32, %c0_i32_0 : i32, i32
  }
  func.func @transform_2(%arg0: i32, %arg1: i32) -> (i32, i32) {
    %c0_i32 = arith.constant 0 : i32
    %c0_i32_0 = arith.constant 0 : i32
    %c0_i32_1 = arith.constant 0 : i32
    return %c0_i32, %c0_i32_0 : i32, i32
  }
  func.func @transform_3(%arg0: i32, %arg1: i32) -> (i32, i32, i32) {
    %c0_i32 = arith.constant 0 : i32
    %c0_i32_0 = arith.constant 0 : i32
    return %arg0, %c0_i32, %arg1 : i32, i32, i32
  }
}

module attributes {stable_mosaic.version = 11 : i64} {
  func.func @_conv_kernel_bnrelu(%arg0: i32, %arg1: i32, %arg2: memref<1x4x256xbf16, #tpu.memory_space<vmem>>, %arg3: memref<12x4xbf16, #tpu.memory_space<vmem>>, %arg4: memref<12x1xf32, #tpu.memory_space<vmem>>, %arg5: memref<4x1xf32, #tpu.memory_space<vmem>>, %arg6: memref<4x1xf32, #tpu.memory_space<vmem>>, %arg7: memref<1x12x256xf32, #tpu.memory_space<vmem>>) attributes {dimension_semantics = [#tpu.dimension_semantics<parallel>, #tpu.dimension_semantics<parallel>], iteration_bounds = array<i64: 2, 1>, scalar_prefetch = 0 : i64, scratch_operands = 0 : i64, tpu.core_type = #tpu.core_type<tc>, window_params = [{transform_indices = @transform_0, window_bounds = array<i64: 1, 4, 256>}, {pipeline_mode = #tpu.pipeline_mode<synchronous>, transform_indices = @transform_1, window_bounds = array<i64: 12, 4>}, {pipeline_mode = #tpu.pipeline_mode<synchronous>, transform_indices = @transform_2, window_bounds = array<i64: 12, 1>}, {pipeline_mode = #tpu.pipeline_mode<synchronous>, transform_indices = @transform_3, window_bounds = array<i64: 4, 1>}, {pipeline_mode = #tpu.pipeline_mode<synchronous>, transform_indices = @transform_4, window_bounds = array<i64: 4, 1>}, {transform_indices = @transform_5, window_bounds = array<i64: 1, 12, 256>}]} {
    %c0 = arith.constant 0 : index
    %c0_0 = arith.constant 0 : index
    %c0_1 = arith.constant 0 : index
    %0 = vector.load %arg2[%c0, %c0_0, %c0_1] : memref<1x4x256xbf16, #tpu.memory_space<vmem>>, vector<1x4x256xbf16>
    %1 = vector.shape_cast %0 : vector<1x4x256xbf16> to vector<4x256xbf16>
    %2 = arith.extf %1 : vector<4x256xbf16> to vector<4x256xf32>
    %c0_2 = arith.constant 0 : index
    %c0_3 = arith.constant 0 : index
    %3 = vector.load %arg5[%c0_2, %c0_3] : memref<4x1xf32, #tpu.memory_space<vmem>>, vector<4x1xf32>
    %4 = vector.broadcast %3 : vector<4x1xf32> to vector<4x256xf32>
    %5 = arith.mulf %2, %4 : vector<4x256xf32>
    %c0_4 = arith.constant 0 : index
    %c0_5 = arith.constant 0 : index
    %6 = vector.load %arg6[%c0_4, %c0_5] : memref<4x1xf32, #tpu.memory_space<vmem>>, vector<4x1xf32>
    %7 = vector.broadcast %6 : vector<4x1xf32> to vector<4x256xf32>
    %8 = arith.addf %5, %7 : vector<4x256xf32>
    %cst = arith.constant 0.000000e+00 : f32
    %9 = vector.broadcast %cst : f32 to vector<4x256xf32>
    %10 = arith.maximumf %8, %9 : vector<4x256xf32>
    %11 = arith.truncf %10 : vector<4x256xf32> to vector<4x256xbf16>
    %c0_6 = arith.constant 0 : index
    %c0_7 = arith.constant 0 : index
    %12 = vector.load %arg3[%c0_6, %c0_7] : memref<12x4xbf16, #tpu.memory_space<vmem>>, vector<12x4xbf16>
    %cst_8 = arith.constant dense<0.000000e+00> : vector<12x256xf32>
    %13 = tpu.matmul %12, %11, %cst_8 {dimension_numbers = #tpu.dot_dimension_numbers<[1], [0], [0], [1], [0, 0, 1, 1], [], []>} : vector<12x4xbf16>, vector<4x256xbf16>, vector<12x256xf32> -> vector<12x256xf32>
    %c0_9 = arith.constant 0 : index
    %c0_10 = arith.constant 0 : index
    %14 = vector.load %arg4[%c0_9, %c0_10] : memref<12x1xf32, #tpu.memory_space<vmem>>, vector<12x1xf32>
    %15 = vector.broadcast %14 : vector<12x1xf32> to vector<12x256xf32>
    %16 = arith.addf %13, %15 : vector<12x256xf32>
    %c0_11 = arith.constant 0 : index
    %c0_12 = arith.constant 0 : index
    %c0_13 = arith.constant 0 : index
    %17 = vector.load %arg7[%c0_11, %c0_12, %c0_13] : memref<1x12x256xf32, #tpu.memory_space<vmem>>, vector<1x12x256xf32>
    %18 = vector.shape_cast %17 : vector<1x12x256xf32> to vector<12x256xf32>
    %19 = vector.shape_cast %16 : vector<12x256xf32> to vector<1x12x256xf32>
    tpu.vector_store %arg7[%c0_11, %c0_12, %c0_13], %19 {strides = array<i32>} : memref<1x12x256xf32, #tpu.memory_space<vmem>>, vector<1x12x256xf32>,
    return
  }
  func.func @transform_0(%arg0: i32, %arg1: i32) -> (i32, i32, i32) {
    %c0_i32 = arith.constant 0 : i32
    %c0_i32_0 = arith.constant 0 : i32
    return %arg0, %c0_i32, %arg1 : i32, i32, i32
  }
  func.func @transform_1(%arg0: i32, %arg1: i32) -> (i32, i32) {
    %c0_i32 = arith.constant 0 : i32
    %c0_i32_0 = arith.constant 0 : i32
    %c0_i32_1 = arith.constant 0 : i32
    return %c0_i32, %c0_i32_0 : i32, i32
  }
  func.func @transform_2(%arg0: i32, %arg1: i32) -> (i32, i32) {
    %c0_i32 = arith.constant 0 : i32
    %c0_i32_0 = arith.constant 0 : i32
    %c0_i32_1 = arith.constant 0 : i32
    return %c0_i32, %c0_i32_0 : i32, i32
  }
  func.func @transform_3(%arg0: i32, %arg1: i32) -> (i32, i32) {
    %c0_i32 = arith.constant 0 : i32
    %c0_i32_0 = arith.constant 0 : i32
    %c0_i32_1 = arith.constant 0 : i32
    return %c0_i32, %c0_i32_0 : i32, i32
  }
  func.func @transform_4(%arg0: i32, %arg1: i32) -> (i32, i32) {
    %c0_i32 = arith.constant 0 : i32
    %c0_i32_0 = arith.constant 0 : i32
    %c0_i32_1 = arith.constant 0 : i32
    return %c0_i32, %c0_i32_0 : i32, i32
  }
  func.func @transform_5(%arg0: i32, %arg1: i32) -> (i32, i32, i32) {
    %c0_i32 = arith.constant 0 : i32
    %c0_i32_0 = arith.constant 0 : i32
    return %arg0, %c0_i32, %arg1 : i32, i32, i32
  }
}

module attributes {stable_mosaic.version = 11 : i64} {
  func.func @_conv_kernel_plain(%arg0: i32, %arg1: i32, %arg2: memref<1x6x512xbf16, #tpu.memory_space<vmem>>, %arg3: memref<9x6xbf16, #tpu.memory_space<vmem>>, %arg4: memref<9x1xf32, #tpu.memory_space<vmem>>, %arg5: memref<1x9x512xf32, #tpu.memory_space<vmem>>) attributes {dimension_semantics = [#tpu.dimension_semantics<parallel>, #tpu.dimension_semantics<parallel>], iteration_bounds = array<i64: 2, 1>, scalar_prefetch = 0 : i64, scratch_operands = 0 : i64, tpu.core_type = #tpu.core_type<tc>, window_params = [{transform_indices = @transform_0, window_bounds = array<i64: 1, 6, 512>}, {pipeline_mode = #tpu.pipeline_mode<synchronous>, transform_indices = @transform_1, window_bounds = array<i64: 9, 6>}, {pipeline_mode = #tpu.pipeline_mode<synchronous>, transform_indices = @transform_2, window_bounds = array<i64: 9, 1>}, {transform_indices = @transform_3, window_bounds = array<i64: 1, 9, 512>}]} {
    %c0 = arith.constant 0 : index
    %c0_0 = arith.constant 0 : index
    %0 = vector.load %arg3[%c0, %c0_0] : memref<9x6xbf16, #tpu.memory_space<vmem>>, vector<9x6xbf16>
    %c0_1 = arith.constant 0 : index
    %c0_2 = arith.constant 0 : index
    %c0_3 = arith.constant 0 : index
    %1 = vector.load %arg2[%c0_1, %c0_2, %c0_3] : memref<1x6x512xbf16, #tpu.memory_space<vmem>>, vector<1x6x512xbf16>
    %2 = vector.shape_cast %1 : vector<1x6x512xbf16> to vector<6x512xbf16>
    %cst = arith.constant dense<0.000000e+00> : vector<9x512xf32>
    %3 = tpu.matmul %0, %2, %cst {dimension_numbers = #tpu.dot_dimension_numbers<[1], [0], [0], [1], [0, 0, 1, 1], [], []>} : vector<9x6xbf16>, vector<6x512xbf16>, vector<9x512xf32> -> vector<9x512xf32>
    %c0_4 = arith.constant 0 : index
    %c0_5 = arith.constant 0 : index
    %4 = vector.load %arg4[%c0_4, %c0_5] : memref<9x1xf32, #tpu.memory_space<vmem>>, vector<9x1xf32>
    %5 = vector.broadcast %4 : vector<9x1xf32> to vector<9x512xf32>
    %6 = arith.addf %3, %5 : vector<9x512xf32>
    %c0_6 = arith.constant 0 : index
    %c0_7 = arith.constant 0 : index
    %c0_8 = arith.constant 0 : index
    %7 = vector.load %arg5[%c0_6, %c0_7, %c0_8] : memref<1x9x512xf32, #tpu.memory_space<vmem>>, vector<1x9x512xf32>
    %8 = vector.shape_cast %7 : vector<1x9x512xf32> to vector<9x512xf32>
    %9 = vector.shape_cast %6 : vector<9x512xf32> to vector<1x9x512xf32>
    tpu.vector_store %arg5[%c0_6, %c0_7, %c0_8], %9 {strides = array<i32>} : memref<1x9x512xf32, #tpu.memory_space<vmem>>, vector<1x9x512xf32>,
    return
  }
  func.func @transform_0(%arg0: i32, %arg1: i32) -> (i32, i32, i32) {
    %c0_i32 = arith.constant 0 : i32
    %c0_i32_0 = arith.constant 0 : i32
    return %arg0, %c0_i32, %arg1 : i32, i32, i32
  }
  func.func @transform_1(%arg0: i32, %arg1: i32) -> (i32, i32) {
    %c0_i32 = arith.constant 0 : i32
    %c0_i32_0 = arith.constant 0 : i32
    %c0_i32_1 = arith.constant 0 : i32
    return %c0_i32, %c0_i32_0 : i32, i32
  }
  func.func @transform_2(%arg0: i32, %arg1: i32) -> (i32, i32) {
    %c0_i32 = arith.constant 0 : i32
    %c0_i32_0 = arith.constant 0 : i32
    %c0_i32_1 = arith.constant 0 : i32
    return %c0_i32, %c0_i32_0 : i32, i32
  }
  func.func @transform_3(%arg0: i32, %arg1: i32) -> (i32, i32, i32) {
    %c0_i32 = arith.constant 0 : i32
    %c0_i32_0 = arith.constant 0 : i32
    return %arg0, %c0_i32, %arg1 : i32, i32, i32
  }
}

module attributes {stable_mosaic.version = 11 : i64} {
  func.func @kernel(%arg0: i32, %arg1: i32, %arg2: memref<1x2x2x256xf32, #tpu.memory_space<vmem>>, %arg3: memref<1x9x2x2x256xf32, #tpu.memory_space<vmem>>, %arg4: memref<1x9x2x2x256xf32, #tpu.memory_space<vmem>>, %arg5: memref<9x2x2x256xf32, #tpu.memory_space<vmem>>, %arg6: memref<1x2x2x256xf32, #tpu.memory_space<vmem>>) attributes {dimension_semantics = [#tpu.dimension_semantics<parallel>, #tpu.dimension_semantics<parallel>], iteration_bounds = array<i64: 2, 1>, scalar_prefetch = 0 : i64, scratch_operands = 0 : i64, tpu.core_type = #tpu.core_type<tc>, window_params = [{transform_indices = @transform_0, window_bounds = array<i64: 1, 2, 2, 256>}, {transform_indices = @transform_1, window_bounds = array<i64: 1, 9, 2, 2, 256>}, {transform_indices = @transform_2, window_bounds = array<i64: 1, 9, 2, 2, 256>}, {transform_indices = @transform_3, window_bounds = array<i64: 9, 2, 2, 256>}, {transform_indices = @transform_4, window_bounds = array<i64: 1, 2, 2, 256>}]} {
    %c0 = arith.constant 0 : index
    %c0_0 = arith.constant 0 : index
    %c0_1 = arith.constant 0 : index
    %c0_2 = arith.constant 0 : index
    %0 = vector.load %arg2[%c0, %c0_0, %c0_1, %c0_2] : memref<1x2x2x256xf32, #tpu.memory_space<vmem>>, vector<1x2x2x256xf32>
    %1 = vector.shape_cast %0 : vector<1x2x2x256xf32> to vector<2x2x256xf32>
    %cst = arith.constant 0.707106769 : f32
    %2 = vector.broadcast %cst : f32 to vector<2x2x256xf32>
    %3 = arith.mulf %1, %2 : vector<2x2x256xf32>
    %c0_3 = arith.constant 0 : index
    %c0_4 = arith.constant 0 : index
    %c0_5 = arith.constant 0 : index
    %c0_6 = arith.constant 0 : index
    %c0_7 = arith.constant 0 : index
    %4 = vector.load %arg3[%c0_3, %c0_4, %c0_5, %c0_6, %c0_7] : memref<1x9x2x2x256xf32, #tpu.memory_space<vmem>>, vector<1x9x2x2x256xf32>
    %5 = vector.shape_cast %4 : vector<1x9x2x2x256xf32> to vector<9x2x2x256xf32>
    %c0_8 = arith.constant 0 : index
    %c0_9 = arith.constant 0 : index
    %c0_10 = arith.constant 0 : index
    %c0_11 = arith.constant 0 : index
    %c0_12 = arith.constant 0 : index
    %6 = vector.load %arg4[%c0_8, %c0_9, %c0_10, %c0_11, %c0_12] : memref<1x9x2x2x256xf32, #tpu.memory_space<vmem>>, vector<1x9x2x2x256xf32>
    %7 = vector.shape_cast %6 : vector<1x9x2x2x256xf32> to vector<9x2x2x256xf32>
    %c0_13 = arith.constant 0 : index
    %c0_14 = arith.constant 0 : index
    %c0_15 = arith.constant 0 : index
    %c0_16 = arith.constant 0 : index
    %8 = vector.load %arg5[%c0_13, %c0_14, %c0_15, %c0_16] : memref<9x2x2x256xf32, #tpu.memory_space<vmem>>, vector<9x2x2x256xf32>
    %9 = vector.shape_cast %3 : vector<2x2x256xf32> to vector<1x2x2x256xf32>
    %10 = arith.addf %5, %8 : vector<9x2x2x256xf32>
    %11 = vector.broadcast %9 : vector<1x2x2x256xf32> to vector<9x2x2x256xf32>
    %12 = arith.mulf %11, %10 : vector<9x2x2x256xf32>
    %cst_17 = arith.constant dense<0.000000e+00> : vector<9x2x256xf32>
    %13 = vector.multi_reduction <add>, %12, %cst_17 [2] : vector<9x2x2x256xf32> to vector<9x2x256xf32>
    %14 = vector.shape_cast %13 : vector<9x2x256xf32> to vector<9x2x1x256xf32>
    %cst_18 = arith.constant dense<0xFF800000> : vector<2x1x256xf32>
    %15 = vector.multi_reduction <maximumf>, %14, %cst_18 [0] : vector<9x2x1x256xf32> to vector<2x1x256xf32>
    %16 = vector.shape_cast %15 : vector<2x1x256xf32> to vector<1x2x1x256xf32>
    %17 = vector.broadcast %16 : vector<1x2x1x256xf32> to vector<9x2x1x256xf32>
    %18 = arith.subf %14, %17 : vector<9x2x1x256xf32>
    %19 = math.exp %18 : vector<9x2x1x256xf32>
    %cst_19 = arith.constant dense<0.000000e+00> : vector<2x1x256xf32>
    %20 = vector.multi_reduction <add>, %19, %cst_19 [0] : vector<9x2x1x256xf32> to vector<2x1x256xf32>
    %21 = vector.shape_cast %20 : vector<2x1x256xf32> to vector<1x2x1x256xf32>
    %22 = tpu.reciprocal %21 {approx = true} : vector<1x2x1x256xf32> -> vector<1x2x1x256xf32>
    %23 = vector.broadcast %22 : vector<1x2x1x256xf32> to vector<9x2x1x256xf32>
    %24 = arith.mulf %19, %23 : vector<9x2x1x256xf32>
    %25 = vector.broadcast %24 : vector<9x2x1x256xf32> to vector<9x2x2x256xf32>
    %26 = arith.mulf %25, %7 : vector<9x2x2x256xf32>
    %cst_20 = arith.constant dense<0.000000e+00> : vector<2x2x256xf32>
    %27 = vector.multi_reduction <add>, %26, %cst_20 [0] : vector<9x2x2x256xf32> to vector<2x2x256xf32>
    %c0_21 = arith.constant 0 : index
    %c0_22 = arith.constant 0 : index
    %c0_23 = arith.constant 0 : index
    %c0_24 = arith.constant 0 : index
    %28 = vector.load %arg6[%c0_21, %c0_22, %c0_23, %c0_24] : memref<1x2x2x256xf32, #tpu.memory_space<vmem>>, vector<1x2x2x256xf32>
    %29 = vector.shape_cast %28 : vector<1x2x2x256xf32> to vector<2x2x256xf32>
    %30 = vector.shape_cast %27 : vector<2x2x256xf32> to vector<1x2x2x256xf32>
    tpu.vector_store %arg6[%c0_21, %c0_22, %c0_23, %c0_24], %30 {strides = array<i32>} : memref<1x2x2x256xf32, #tpu.memory_space<vmem>>, vector<1x2x2x256xf32>,
    return
  }
  func.func @transform_0(%arg0: i32, %arg1: i32) -> (i32, i32, i32, i32) {
    %c0_i32 = arith.constant 0 : i32
    %c0_i32_0 = arith.constant 0 : i32
    %c0_i32_1 = arith.constant 0 : i32
    return %arg0, %c0_i32, %c0_i32_0, %arg1 : i32, i32, i32, i32
  }
  func.func @transform_1(%arg0: i32, %arg1: i32) -> (i32, i32, i32, i32, i32) {
    %c0_i32 = arith.constant 0 : i32
    %c0_i32_0 = arith.constant 0 : i32
    %c0_i32_1 = arith.constant 0 : i32
    %c0_i32_2 = arith.constant 0 : i32
    return %arg0, %c0_i32, %c0_i32_0, %c0_i32_1, %arg1 : i32, i32, i32, i32, i32
  }
  func.func @transform_2(%arg0: i32, %arg1: i32) -> (i32, i32, i32, i32, i32) {
    %c0_i32 = arith.constant 0 : i32
    %c0_i32_0 = arith.constant 0 : i32
    %c0_i32_1 = arith.constant 0 : i32
    %c0_i32_2 = arith.constant 0 : i32
    return %arg0, %c0_i32, %c0_i32_0, %c0_i32_1, %arg1 : i32, i32, i32, i32, i32
  }
  func.func @transform_3(%arg0: i32, %arg1: i32) -> (i32, i32, i32, i32) {
    %c0_i32 = arith.constant 0 : i32
    %c0_i32_0 = arith.constant 0 : i32
    %c0_i32_1 = arith.constant 0 : i32
    %c0_i32_2 = arith.constant 0 : i32
    return %c0_i32, %c0_i32_0, %c0_i32_1, %arg1 : i32, i32, i32, i32
  }
  func.func @transform_4(%arg0: i32, %arg1: i32) -> (i32, i32, i32, i32) {
    %c0_i32 = arith.constant 0 : i32
    %c0_i32_0 = arith.constant 0 : i32
    %c0_i32_1 = arith.constant 0 : i32
    return %arg0, %c0_i32, %c0_i32_0, %arg1 : i32, i32, i32, i32
  }
}

module attributes {stable_mosaic.version = 11 : i64} {
  func.func @_depconv_kernel(%arg0: i32, %arg1: i32, %arg2: i32, %arg3: memref<1x1x243x256xbf16, #tpu.memory_space<vmem>>, %arg4: memref<1x2x243xbf16, #tpu.memory_space<vmem>>, %arg5: memref<1x1x2x256xf32, #tpu.memory_space<vmem>>, %arg6: memref<1x1x2x256xf32, #tpu.memory_space<vmem>>) attributes {dimension_semantics = [#tpu.dimension_semantics<parallel>, #tpu.dimension_semantics<parallel>, #tpu.dimension_semantics<parallel>], iteration_bounds = array<i64: 2, 2, 1>, scalar_prefetch = 0 : i64, scratch_operands = 0 : i64, tpu.core_type = #tpu.core_type<tc>, window_params = [{transform_indices = @transform_0, window_bounds = array<i64: 1, 1, 243, 256>}, {transform_indices = @transform_1, window_bounds = array<i64: 1, 2, 243>}, {transform_indices = @transform_2, window_bounds = array<i64: 1, 1, 2, 256>}, {transform_indices = @transform_3, window_bounds = array<i64: 1, 1, 2, 256>}]} {
    %c0 = arith.constant 0 : index
    %c0_0 = arith.constant 0 : index
    %c0_1 = arith.constant 0 : index
    %0 = vector.load %arg4[%c0, %c0_0, %c0_1] : memref<1x2x243xbf16, #tpu.memory_space<vmem>>, vector<1x2x243xbf16>
    %1 = vector.shape_cast %0 : vector<1x2x243xbf16> to vector<2x243xbf16>
    %c0_2 = arith.constant 0 : index
    %c0_3 = arith.constant 0 : index
    %c0_4 = arith.constant 0 : index
    %c0_5 = arith.constant 0 : index
    %2 = vector.load %arg3[%c0_2, %c0_3, %c0_4, %c0_5] : memref<1x1x243x256xbf16, #tpu.memory_space<vmem>>, vector<1x1x243x256xbf16>
    %3 = vector.shape_cast %2 : vector<1x1x243x256xbf16> to vector<243x256xbf16>
    %cst = arith.constant dense<0.000000e+00> : vector<2x256xf32>
    %4 = tpu.matmul %1, %3, %cst {dimension_numbers = #tpu.dot_dimension_numbers<[1], [0], [0], [1], [0, 0, 1, 1], [], []>} : vector<2x243xbf16>, vector<243x256xbf16>, vector<2x256xf32> -> vector<2x256xf32>
    %c0_6 = arith.constant 0 : index
    %c0_7 = arith.constant 0 : index
    %c0_8 = arith.constant 0 : index
    %c0_9 = arith.constant 0 : index
    %5 = vector.load %arg5[%c0_6, %c0_7, %c0_8, %c0_9] : memref<1x1x2x256xf32, #tpu.memory_space<vmem>>, vector<1x1x2x256xf32>
    %6 = vector.shape_cast %5 : vector<1x1x2x256xf32> to vector<2x256xf32>
    %7 = arith.addf %6, %4 : vector<2x256xf32>
    %c0_10 = arith.constant 0 : index
    %c0_11 = arith.constant 0 : index
    %c0_12 = arith.constant 0 : index
    %c0_13 = arith.constant 0 : index
    %8 = vector.load %arg6[%c0_10, %c0_11, %c0_12, %c0_13] : memref<1x1x2x256xf32, #tpu.memory_space<vmem>>, vector<1x1x2x256xf32>
    %9 = vector.shape_cast %8 : vector<1x1x2x256xf32> to vector<2x256xf32>
    %10 = vector.shape_cast %7 : vector<2x256xf32> to vector<1x1x2x256xf32>
    tpu.vector_store %arg6[%c0_10, %c0_11, %c0_12, %c0_13], %10 {strides = array<i32>} : memref<1x1x2x256xf32, #tpu.memory_space<vmem>>, vector<1x1x2x256xf32>,
    return
  }
  func.func @transform_0(%arg0: i32, %arg1: i32, %arg2: i32) -> (i32, i32, i32, i32) {
    %c0_i32 = arith.constant 0 : i32
    %c0_i32_0 = arith.constant 0 : i32
    return %arg0, %arg1, %c0_i32, %arg2 : i32, i32, i32, i32
  }
  func.func @transform_1(%arg0: i32, %arg1: i32, %arg2: i32) -> (i32, i32, i32) {
    %c0_i32 = arith.constant 0 : i32
    %c0_i32_0 = arith.constant 0 : i32
    %c0_i32_1 = arith.constant 0 : i32
    return %arg1, %c0_i32, %c0_i32_0 : i32, i32, i32
  }
  func.func @transform_2(%arg0: i32, %arg1: i32, %arg2: i32) -> (i32, i32, i32, i32) {
    %c0_i32 = arith.constant 0 : i32
    %c0_i32_0 = arith.constant 0 : i32
    return %arg0, %arg1, %c0_i32, %arg2 : i32, i32, i32, i32
  }
  func.func @transform_3(%arg0: i32, %arg1: i32, %arg2: i32) -> (i32, i32, i32, i32) {
    %c0_i32 = arith.constant 0 : i32
    %c0_i32_0 = arith.constant 0 : i32
    return %arg0, %arg1, %c0_i32, %arg2 : i32, i32, i32, i32
  }
}

module attributes {stable_mosaic.version = 11 : i64} {
  func.func @_conv_kernel_bnrelu(%arg0: i32, %arg1: i32, %arg2: memref<1x4x256xbf16, #tpu.memory_space<vmem>>, %arg3: memref<16x4xbf16, #tpu.memory_space<vmem>>, %arg4: memref<16x1xf32, #tpu.memory_space<vmem>>, %arg5: memref<4x1xf32, #tpu.memory_space<vmem>>, %arg6: memref<4x1xf32, #tpu.memory_space<vmem>>, %arg7: memref<1x16x256xf32, #tpu.memory_space<vmem>>) attributes {dimension_semantics = [#tpu.dimension_semantics<parallel>, #tpu.dimension_semantics<parallel>], iteration_bounds = array<i64: 2, 1>, scalar_prefetch = 0 : i64, scratch_operands = 0 : i64, tpu.core_type = #tpu.core_type<tc>, window_params = [{transform_indices = @transform_0, window_bounds = array<i64: 1, 4, 256>}, {pipeline_mode = #tpu.pipeline_mode<synchronous>, transform_indices = @transform_1, window_bounds = array<i64: 16, 4>}, {pipeline_mode = #tpu.pipeline_mode<synchronous>, transform_indices = @transform_2, window_bounds = array<i64: 16, 1>}, {pipeline_mode = #tpu.pipeline_mode<synchronous>, transform_indices = @transform_3, window_bounds = array<i64: 4, 1>}, {pipeline_mode = #tpu.pipeline_mode<synchronous>, transform_indices = @transform_4, window_bounds = array<i64: 4, 1>}, {transform_indices = @transform_5, window_bounds = array<i64: 1, 16, 256>}]} {
    %c0 = arith.constant 0 : index
    %c0_0 = arith.constant 0 : index
    %c0_1 = arith.constant 0 : index
    %0 = vector.load %arg2[%c0, %c0_0, %c0_1] : memref<1x4x256xbf16, #tpu.memory_space<vmem>>, vector<1x4x256xbf16>
    %1 = vector.shape_cast %0 : vector<1x4x256xbf16> to vector<4x256xbf16>
    %2 = arith.extf %1 : vector<4x256xbf16> to vector<4x256xf32>
    %c0_2 = arith.constant 0 : index
    %c0_3 = arith.constant 0 : index
    %3 = vector.load %arg5[%c0_2, %c0_3] : memref<4x1xf32, #tpu.memory_space<vmem>>, vector<4x1xf32>
    %4 = vector.broadcast %3 : vector<4x1xf32> to vector<4x256xf32>
    %5 = arith.mulf %2, %4 : vector<4x256xf32>
    %c0_4 = arith.constant 0 : index
    %c0_5 = arith.constant 0 : index
    %6 = vector.load %arg6[%c0_4, %c0_5] : memref<4x1xf32, #tpu.memory_space<vmem>>, vector<4x1xf32>
    %7 = vector.broadcast %6 : vector<4x1xf32> to vector<4x256xf32>
    %8 = arith.addf %5, %7 : vector<4x256xf32>
    %cst = arith.constant 0.000000e+00 : f32
    %9 = vector.broadcast %cst : f32 to vector<4x256xf32>
    %10 = arith.maximumf %8, %9 : vector<4x256xf32>
    %11 = arith.truncf %10 : vector<4x256xf32> to vector<4x256xbf16>
    %c0_6 = arith.constant 0 : index
    %c0_7 = arith.constant 0 : index
    %12 = vector.load %arg3[%c0_6, %c0_7] : memref<16x4xbf16, #tpu.memory_space<vmem>>, vector<16x4xbf16>
    %cst_8 = arith.constant dense<0.000000e+00> : vector<16x256xf32>
    %13 = tpu.matmul %12, %11, %cst_8 {dimension_numbers = #tpu.dot_dimension_numbers<[1], [0], [0], [1], [0, 0, 1, 1], [], []>} : vector<16x4xbf16>, vector<4x256xbf16>, vector<16x256xf32> -> vector<16x256xf32>
    %c0_9 = arith.constant 0 : index
    %c0_10 = arith.constant 0 : index
    %14 = vector.load %arg4[%c0_9, %c0_10] : memref<16x1xf32, #tpu.memory_space<vmem>>, vector<16x1xf32>
    %15 = vector.broadcast %14 : vector<16x1xf32> to vector<16x256xf32>
    %16 = arith.addf %13, %15 : vector<16x256xf32>
    %c0_11 = arith.constant 0 : index
    %c0_12 = arith.constant 0 : index
    %c0_13 = arith.constant 0 : index
    %17 = vector.load %arg7[%c0_11, %c0_12, %c0_13] : memref<1x16x256xf32, #tpu.memory_space<vmem>>, vector<1x16x256xf32>
    %18 = vector.shape_cast %17 : vector<1x16x256xf32> to vector<16x256xf32>
    %19 = vector.shape_cast %16 : vector<16x256xf32> to vector<1x16x256xf32>
    tpu.vector_store %arg7[%c0_11, %c0_12, %c0_13], %19 {strides = array<i32>} : memref<1x16x256xf32, #tpu.memory_space<vmem>>, vector<1x16x256xf32>,
    return
  }
  func.func @transform_0(%arg0: i32, %arg1: i32) -> (i32, i32, i32) {
    %c0_i32 = arith.constant 0 : i32
    %c0_i32_0 = arith.constant 0 : i32
    return %arg0, %c0_i32, %arg1 : i32, i32, i32
  }
  func.func @transform_1(%arg0: i32, %arg1: i32) -> (i32, i32) {
    %c0_i32 = arith.constant 0 : i32
    %c0_i32_0 = arith.constant 0 : i32
    %c0_i32_1 = arith.constant 0 : i32
    return %c0_i32, %c0_i32_0 : i32, i32
  }
  func.func @transform_2(%arg0: i32, %arg1: i32) -> (i32, i32) {
    %c0_i32 = arith.constant 0 : i32
    %c0_i32_0 = arith.constant 0 : i32
    %c0_i32_1 = arith.constant 0 : i32
    return %c0_i32, %c0_i32_0 : i32, i32
  }
  func.func @transform_3(%arg0: i32, %arg1: i32) -> (i32, i32) {
    %c0_i32 = arith.constant 0 : i32
    %c0_i32_0 = arith.constant 0 : i32
    %c0_i32_1 = arith.constant 0 : i32
    return %c0_i32, %c0_i32_0 : i32, i32
  }
  func.func @transform_4(%arg0: i32, %arg1: i32) -> (i32, i32) {
    %c0_i32 = arith.constant 0 : i32
    %c0_i32_0 = arith.constant 0 : i32
    %c0_i32_1 = arith.constant 0 : i32
    return %c0_i32, %c0_i32_0 : i32, i32
  }
  func.func @transform_5(%arg0: i32, %arg1: i32) -> (i32, i32, i32) {
    %c0_i32 = arith.constant 0 : i32
    %c0_i32_0 = arith.constant 0 : i32
    return %arg0, %c0_i32, %arg1 : i32, i32, i32
  }
}

module attributes {stable_mosaic.version = 11 : i64} {
  func.func @_bn_add_relu_kernel(%arg0: i32, %arg1: i32, %arg2: memref<1x16x256xf32, #tpu.memory_space<vmem>>, %arg3: memref<1x16x256xf32, #tpu.memory_space<vmem>>, %arg4: memref<16x1xf32, #tpu.memory_space<vmem>>, %arg5: memref<16x1xf32, #tpu.memory_space<vmem>>, %arg6: memref<1x16x256xf32, #tpu.memory_space<vmem>>) attributes {dimension_semantics = [#tpu.dimension_semantics<parallel>, #tpu.dimension_semantics<parallel>], iteration_bounds = array<i64: 2, 1>, scalar_prefetch = 0 : i64, scratch_operands = 0 : i64, tpu.core_type = #tpu.core_type<tc>, window_params = [{transform_indices = @transform_0, window_bounds = array<i64: 1, 16, 256>}, {transform_indices = @transform_1, window_bounds = array<i64: 1, 16, 256>}, {pipeline_mode = #tpu.pipeline_mode<synchronous>, transform_indices = @transform_2, window_bounds = array<i64: 16, 1>}, {pipeline_mode = #tpu.pipeline_mode<synchronous>, transform_indices = @transform_3, window_bounds = array<i64: 16, 1>}, {transform_indices = @transform_4, window_bounds = array<i64: 1, 16, 256>}]} {
    %c0 = arith.constant 0 : index
    %c0_0 = arith.constant 0 : index
    %c0_1 = arith.constant 0 : index
    %0 = vector.load %arg2[%c0, %c0_0, %c0_1] : memref<1x16x256xf32, #tpu.memory_space<vmem>>, vector<1x16x256xf32>
    %1 = vector.shape_cast %0 : vector<1x16x256xf32> to vector<16x256xf32>
    %c0_2 = arith.constant 0 : index
    %c0_3 = arith.constant 0 : index
    %2 = vector.load %arg4[%c0_2, %c0_3] : memref<16x1xf32, #tpu.memory_space<vmem>>, vector<16x1xf32>
    %3 = vector.broadcast %2 : vector<16x1xf32> to vector<16x256xf32>
    %4 = arith.mulf %1, %3 : vector<16x256xf32>
    %c0_4 = arith.constant 0 : index
    %c0_5 = arith.constant 0 : index
    %5 = vector.load %arg5[%c0_4, %c0_5] : memref<16x1xf32, #tpu.memory_space<vmem>>, vector<16x1xf32>
    %6 = vector.broadcast %5 : vector<16x1xf32> to vector<16x256xf32>
    %7 = arith.addf %4, %6 : vector<16x256xf32>
    %c0_6 = arith.constant 0 : index
    %c0_7 = arith.constant 0 : index
    %c0_8 = arith.constant 0 : index
    %8 = vector.load %arg3[%c0_6, %c0_7, %c0_8] : memref<1x16x256xf32, #tpu.memory_space<vmem>>, vector<1x16x256xf32>
    %9 = vector.shape_cast %8 : vector<1x16x256xf32> to vector<16x256xf32>
    %10 = arith.addf %7, %9 : vector<16x256xf32>
    %cst = arith.constant 0.000000e+00 : f32
    %11 = vector.broadcast %cst : f32 to vector<16x256xf32>
    %12 = arith.maximumf %10, %11 : vector<16x256xf32>
    %c0_9 = arith.constant 0 : index
    %c0_10 = arith.constant 0 : index
    %c0_11 = arith.constant 0 : index
    %13 = vector.load %arg6[%c0_9, %c0_10, %c0_11] : memref<1x16x256xf32, #tpu.memory_space<vmem>>, vector<1x16x256xf32>
    %14 = vector.shape_cast %13 : vector<1x16x256xf32> to vector<16x256xf32>
    %15 = vector.shape_cast %12 : vector<16x256xf32> to vector<1x16x256xf32>
    tpu.vector_store %arg6[%c0_9, %c0_10, %c0_11], %15 {strides = array<i32>} : memref<1x16x256xf32, #tpu.memory_space<vmem>>, vector<1x16x256xf32>,
    return
  }
  func.func @transform_0(%arg0: i32, %arg1: i32) -> (i32, i32, i32) {
    %c0_i32 = arith.constant 0 : i32
    %c0_i32_0 = arith.constant 0 : i32
    return %arg0, %c0_i32, %arg1 : i32, i32, i32
  }
  func.func @transform_1(%arg0: i32, %arg1: i32) -> (i32, i32, i32) {
    %c0_i32 = arith.constant 0 : i32
    %c0_i32_0 = arith.constant 0 : i32
    return %arg0, %c0_i32, %arg1 : i32, i32, i32
  }
  func.func @transform_2(%arg0: i32, %arg1: i32) -> (i32, i32) {
    %c0_i32 = arith.constant 0 : i32
    %c0_i32_0 = arith.constant 0 : i32
    %c0_i32_1 = arith.constant 0 : i32
    return %c0_i32, %c0_i32_0 : i32, i32
  }
  func.func @transform_3(%arg0: i32, %arg1: i32) -> (i32, i32) {
    %c0_i32 = arith.constant 0 : i32
    %c0_i32_0 = arith.constant 0 : i32
    %c0_i32_1 = arith.constant 0 : i32
    return %c0_i32, %c0_i32_0 : i32, i32
  }
  func.func @transform_4(%arg0: i32, %arg1: i32) -> (i32, i32, i32) {
    %c0_i32 = arith.constant 0 : i32
    %c0_i32_0 = arith.constant 0 : i32
    return %arg0, %c0_i32, %arg1 : i32, i32, i32
  }
}

</mosaic_0001>

<bundles_post_ra>
// kernel: bottleneck_forward.8
= control target key start
LH: loop header
LB: loop body
LE: loop exit
PB: predicated region body
PF: predicated region fallthrough
CT: control target
= control target key end

     0   :  { %s457_s12 = smov 0   ;;  %s459_s13 = smov 0   ;;  %s496_s0 = inlined_call_operand.vmem [shape: bf16[2,16,256], index: 0, kind: input, shape index: {}]   ;;  %s497_s1 = inlined_call_operand.vmem [shape: bf16[4,16], index: 1, kind: input, shape index: {}]   ;;  %s498_s2 = inlined_call_operand.vmem [shape: f32[4,1], index: 2, kind: input, shape index: {}]   ;;  %s499_s3 = inlined_call_operand.vmem [shape: f32[2,4,256], index: 3, kind: output, shape index: {}]  }
   0x1   :  { %s461_s14 = smov 0  }
   0x2 LB: > { %s25_s15 = sadd.s32 1, %s430_s13  ;;  %p371_p0 = scmp.ge.s32.totalorder %s434_s14, 1  ;;  %s434_s14 = sphi %s461_s14, %s13_s14   ;;  %s430_s13 = sphi %s459_s13, %s501_s13   ;;  %s426_s12 = sphi %s457_s12, %s500_s12  }
   0x3   : > { %p27_p1 = scmp.ge.s32.totalorder %s25_s15, 2  ;;  %p158_p2 = scmp.lt.s32.totalorder %s434_s14, 3 }
   0x5   : > { %s503_s15 = smov (%p27_p1, %s25_s15), 0  ;;  %p159_p3 = pnand %p371_p0, %p158_p2 }
   0x6   : > { %p191_p4 = scmp.lt.s32.totalorder (!%p159_p3), %s426_s12, 1  ;;  %v436_v0 = vmov (!%p159_p3), 0   ;;  %v214_v1 = vld [vmem:[%s498_s2] sm:$0xf] (!%p159_p3)  ;;  %vm230_vm0 = vcmask (!%p159_p3), 130048  }
   0x7   : > { %162 = sbr.rel (%p159_p3) target bundleno = 240 (0xf0), region = 32  ;;  %266 = vmatprep.mubr.bf16.mxu0 (!%p159_p3), %v436_v0  ;;  %408 = vset.pattern.permute.xlu0 (!%p159_p3), %v436_v0  ;;  %v211_v4 = vld [vmem:[%s497_s1] sm:$0x3] (!%p159_p3) }
   0x8   : > { %217 = vperm.xlu0 (!%p159_p3), %408, %v214_v1  }
   0xe   : > { %s505_s12 = smov (!%p191_p4, %s426_s12), 1 }
   0xf   : > { %s381_s18 = sshll.u32 %s505_s12, 4  ;;  %s382_s24 = sshll.u32 %s505_s12, 3 }
  0x10   : > { %s198_s21 = scalar_lea.vmem %s496_s0, %s381_s18  ;;  %s208_s27 = scalar_lea.vmem %s499_s3, %s382_s24 }
  0x11   : > { %v409_v2 = vld [vmem:[%s198_s21 + $0x4] ss:$8 sps:$4 sm:$0xff]   ;;  %v411_v3 = vld [vmem:[%s198_s21] ss:$8 sps:$4 sm:$0xff]  }
  0x12   : > { %234 = vmatprep.subr.bf16.mxu0 %v409_v2 }
  0x13   : > { %235 = vmatpush1.bf16.msra.mxu0 %v411_v3 }
  0x16   : > { %378 = vmatmul.mubr.msk.bf16.vlgmr.msra.gmra.mrb[0].mxu0 %vm230_vm0, %v211_v4 }
  0x87   : > { %v218_v5 = vpop.permute.xlu0 %217 }
  0xe9   : > { %v268_v6 = vpop.f32.mrb[0].mxu0 }
  0xea   : > { %v269_v7 = vadd.f32 %v268_v6, %v218_v5  ;;  %v270_v8 = vpop.f32.mrb[1].mxu0 }
  0xeb   : > { %v271_v9 = vadd.f32 %v270_v8, %v218_v5  ;;  %v272_v10 = vpop.f32.mrb[2].mxu0 }
  0xec   : > { %v273_v11 = vpop.f32.mrb[3].mxu0 }
  0xed   : > { %v277_v12 = vcombine.low %v269_v7, %v271_v9 }
  0xef   : > { %279 = vst [vmem:[%s208_s27] sm:$0xff] %v277_v12 }
  0xf0 PF: > { %s13_s14 = sadd.s32 1, %s434_s14   ;;  %s500_s12 = smov %s430_s13 }
  0xf1   : > { %p10_p5 = scmp.ge.s32.totalorder %s13_s14, 4   ;;  %s501_s13 = smov %s503_s15 }
  0xf3   :  { %12 = sbr.rel (!%p10_p5) target bundleno = 2 (0x2), region = 62 }

// kernel: bottleneck_forward.10
= control target key start
LH: loop header
LB: loop body
LE: loop exit
PB: predicated region body
PF: predicated region fallthrough
CT: control target
= control target key end

     0   :  { %v35_v0 = vlaneseq  ;;  %v121_v2 = vmov 1966171168   ;;  %v122_v4 = vmov 0   ;;  %vm50_vm0 = vcmask 1040384   ;;  %s155_s0 = inlined_call_operand.vmem [shape: bf16[1,2,256], index: 0, kind: input, shape index: {}]   ;;  %s156_s2 = inlined_call_operand.vmem [shape: f32[2,1], index: 2, kind: input, shape index: {}]   ;;  %s157_s1 = inlined_call_operand.vmem [shape: bf16[2,2], index: 1, kind: input, shape index: {}]   ;;  %s158_s3 = inlined_call_operand.vmem [shape: f32[1,2,256], index: 3, kind: output, shape index: {}]  }
   0x1   :  { %v114_v1 = vld.sshfl [vmem:[%s155_s0] sm:$0x11 pattern:$0x75316420]  ;;  %v33_v3 = vunpack.c.l.s4 %v121_v2  ;;  %89 = vmatprep.mubr.bf16.mxu0 %v122_v4  ;;  %120 = vset.pattern.permute.xlu0 %v122_v4  ;;  %vm46_vm1 = vcmask 15360  }
   0x2   :  { %v36_v5 = vshrl.u32 %v35_v0, 7  ;;  %v17_v6 = vld [vmem:[%s156_s2] sm:$0x3]  ;;  %v31_v7 = vcombine.high %v114_v1, %v114_v1 }
   0x3   :  { %v34_v8 = vunpack.c.0.s8 %v33_v3  ;;  %20 = vperm.xlu0 %120, %v17_v6   ;;  %v15_v13 = vld [vmem:[%s157_s1] sm:$0x1] }
   0x5   :  { %v37_v9 = vsub.s32 %v34_v8, %v36_v5 }
   0x7   :  { %v45_v10 = vrot.slane %v31_v7, %v37_v9  ;;  %v38_v11 = vrot.slane %v114_v1, %v37_v9 }
   0x9   :  { %115 = vmatprep.subr.msk.bf16.mxu0 %vm50_vm0, %v45_v10  ;;  %v52_v12 = vsel %vm50_vm0, %v38_v11, 0 }
   0xa   :  { %58 = vmatpush1.bf16.msra.mxu0 %v52_v12 }
   0xd   :  { %116 = vmatmul.mubr.msk.bf16.vlgmr.msra.gmra.mrb[0].mxu0 %vm46_vm1, %v15_v13 }
  0x82   :  { %v21_v14 = vpop.permute.xlu0 %20 }
  0xe0   :  { %v91_v15 = vpop.f32.mrb[0].mxu0 }
  0xe1   :  { %v92_v16 = vadd.f32 %v91_v15, %v21_v14  ;;  %v93_v17 = vpop.f32.mrb[1].mxu0 }
  0xe2   :  { %v94_v18 = vadd.f32 %v93_v17, %v21_v14  ;;  %v95_v19 = vpop.f32.mrb[2].mxu0 }
  0xe3   :  { %v96_v20 = vpop.f32.mrb[3].mxu0 }
  0xe4   :  { %v100_v21 = vcombine.low %v92_v16, %v94_v18 }
  0xe6   :  { %117 = vst.sshfl [vmem:[%s158_s3] sm:$0x33 pattern:$0x76325410] %v100_v21 }

// kernel: bottleneck_forward.12
= control target key start
LH: loop header
LB: loop body
LE: loop exit
PB: predicated region body
PF: predicated region fallthrough
CT: control target
= control target key end

     0   :  { %s538_s12 = smov 0   ;;  %s540_s13 = smov 0   ;;  %s580_s0 = inlined_call_operand.vmem [shape: bf16[2,6,512], index: 0, kind: input, shape index: {}]   ;;  %s581_s1 = inlined_call_operand.vmem [shape: bf16[9,6], index: 1, kind: input, shape index: {}]   ;;  %s582_s2 = inlined_call_operand.vmem [shape: f32[9,1], index: 2, kind: input, shape index: {}]   ;;  %s583_s3 = inlined_call_operand.vmem [shape: f32[2,9,512], index: 3, kind: output, shape index: {}]  }
   0x1   :  { %s542_s14 = smov 0  }
   0x2 LB: > { %s25_s15 = sadd.s32 1, %s511_s13  ;;  %p444_p0 = scmp.ge.s32.totalorder %s515_s14, 1  ;;  %s515_s14 = sphi %s542_s14, %s13_s14   ;;  %s511_s13 = sphi %s540_s13, %s585_s13   ;;  %s507_s12 = sphi %s538_s12, %s584_s12  }
   0x3   : > { %p27_p1 = scmp.ge.s32.totalorder %s25_s15, 2  ;;  %p158_p2 = scmp.lt.s32.totalorder %s515_s14, 3 }
   0x5   : > { %s587_s15 = smov (%p27_p1, %s25_s15), 0  ;;  %p159_p3 = pnand %p444_p0, %p158_p2 }
   0x6   : > { %p191_p4 = scmp.lt.s32.totalorder (!%p159_p3), %s507_s12, 1  ;;  %v517_v0 = vmov (!%p159_p3), 0   ;;  %v215_v1 = vld [vmem:[%s582_s2] sm:$0xff] (!%p159_p3)  ;;  %v216_v2 = vld [vmem:[%s582_s2 + $0x8] sm:$0x1] (!%p159_p3)  ;;  %vm246_vm0 = vcmask (!%p159_p3), 1042432  }
   0x7   : > { %162 = sbr.rel (%p159_p3) target bundleno = 242 (0xf2), region = 32  ;;  %291 = vmatprep.mubr.bf16.mxu0 (!%p159_p3), %v517_v0  ;;  %334 = vmatprep.mubr.bf16.mxu1 (!%p159_p3), %v517_v0  ;;  %v492_v11 = vld [vmem:[%s581_s1] sm:$0x1f] (!%p159_p3)   ;;  %vm242_vm1 = vcmask (!%p159_p3), 48128  }
   0x8   : > { %487 = vset.pattern.permute.xlu0 (!%p159_p3), %v517_v0 }
   0x9   : > { %219 = vperm.xlu0 (!%p159_p3), %487, %v215_v1  }
   0xd   : > { %224 = vperm.xlu0 (!%p159_p3), %487, %v216_v2  }
   0xe   : > { %s589_s12 = smov (!%p191_p4, %s507_s12), 1 }
   0xf   : > { %s460_s18 = sshll.u32 %s589_s12, 4  ;;  %s461_s26 = sshll.u32 %s589_s12, 6 }
  0x10   : > { %s198_s23 = scalar_lea.vmem %s580_s0, %s460_s18  ;;  %s208_s29 = scalar_lea.vmem %s583_s3, %s461_s26 }
  0x11   : > { %v213_v3 = vld [vmem:[%s198_s23] sm:$0x77]  ;;  %v214_v4 = vld [vmem:[%s198_s23 + $0x8] sm:$0x77] }
  0x12   : > { %v451_v5 = vcombine.high %v213_v3, %v213_v3  ;;  %v453_v6 = vcombine.high %v214_v4, %v214_v4  ;;  %v450_v7 = vcombine.low %v213_v3, %v213_v3  ;;  %v452_v8 = vcombine.low %v214_v4, %v214_v4 }
  0x14   : > { %454 = vmatprep.subr.msk.bf16.mxu0 %vm246_vm0, %v451_v5  ;;  %456 = vmatprep.subr.msk.bf16.mxu1 %vm246_vm0, %v453_v6  ;;  %v248_v9 = vsel %vm246_vm0, %v450_v7, 0  ;;  %v254_v10 = vsel %vm246_vm0, %v452_v8, 0 }
  0x15   : > { %260 = vmatpush1.bf16.msra.mxu0 %v248_v9  ;;  %303 = vmatpush1.bf16.msra.mxu1 %v254_v10 }
  0x18   : > { %455 = vmatmul.mubr.msk.bf16.vlgmr.msra.gmra.mrb[0].mxu0 %vm242_vm1, %v492_v11  ;;  %457 = vmatmul.mubr.msk.bf16.vlgmr.msra.gmra.mrb[0].mxu1 %vm242_vm1, %v492_v11 }
  0x88   : > { %v220_v12 = vpop.permute.xlu0 %219 }
  0x8c   : > { %v225_v13 = vpop.permute.xlu0 %224 }
  0xeb   : > { %v293_v14 = vpop.f32.mrb[0].mxu0  ;;  %v336_v15 = vpop.f32.mrb[0].mxu1 }
  0xec   : > { %v294_v16 = vadd.f32 %v293_v14, %v220_v12  ;;  %v337_v17 = vadd.f32 %v336_v15, %v220_v12  ;;  %v295_v18 = vpop.f32.mrb[1].mxu0  ;;  %v338_v19 = vpop.f32.mrb[1].mxu1 }
  0xed   : > { %v296_v20 = vadd.f32 %v295_v18, %v220_v12  ;;  %v339_v21 = vadd.f32 %v338_v19, %v220_v12  ;;  %v297_v22 = vpop.f32.mrb[2].mxu0  ;;  %v340_v23 = vpop.f32.mrb[2].mxu1 }
  0xee   : > { %345 = vst [vmem:[%s208_s29] sm:$0xff] %v294_v16  ;;  %347 = vst [vmem:[%s208_s29 + $0x10] sm:$0xff] %v337_v17  ;;  %v298_v24 = vadd.f32 %v297_v22, %v225_v13  ;;  %v341_v25 = vadd.f32 %v340_v23, %v225_v13  ;;  %v299_v26 = vpop.f32.mrb[3].mxu0  ;;  %v342_v27 = vpop.f32.mrb[3].mxu1 }
  0xef   : > { %346 = vst [vmem:[%s208_s29 + $0x8] sm:$0xff] %v296_v20  ;;  %348 = vst [vmem:[%s208_s29 + $0x18] sm:$0xff] %v339_v21  ;;  %v300_v28 = vadd.f32 %v299_v26, %v225_v13  ;;  %v343_v29 = vadd.f32 %v342_v27, %v225_v13 }
  0xf0   : > { %349 = vst [vmem:[%s208_s29 + $0x20] sm:$0x1] %v298_v24  ;;  %351 = vst [vmem:[%s208_s29 + $0x30] sm:$0x1] %v341_v25 }
  0xf1   : > { %350 = vst [vmem:[%s208_s29 + $0x28] sm:$0x1] %v300_v28  ;;  %352 = vst [vmem:[%s208_s29 + $0x38] sm:$0x1] %v343_v29 }
  0xf2 PF: > { %s13_s14 = sadd.s32 1, %s515_s14   ;;  %s584_s12 = smov %s511_s13 }
  0xf3   : > { %p10_p5 = scmp.ge.s32.totalorder %s13_s14, 4   ;;  %s585_s13 = smov %s587_s15 }
  0xf5   :  { %12 = sbr.rel (!%p10_p5) target bundleno = 2 (0x2), region = 62 }

// kernel: bottleneck_forward.9
= control target key start
LH: loop header
LB: loop body
LE: loop exit
PB: predicated region body
PF: predicated region fallthrough
CT: control target
= control target key end

     0   :  { %s566_s18 = smov 0   ;;  %s568_s19 = smov 0   ;;  %s618_s0 = inlined_call_operand.vmem [shape: bf16[2,4,256], index: 0, kind: input, shape index: {}]   ;;  %s619_s1 = inlined_call_operand.vmem [shape: bf16[12,4], index: 1, kind: input, shape index: {}]   ;;  %s620_s2 = inlined_call_operand.vmem [shape: f32[12,1], index: 2, kind: input, shape index: {}]   ;;  %s621_s3 = inlined_call_operand.vmem [shape: f32[4,1], index: 3, kind: input, shape index: {}]   ;;  %s622_s4 = inlined_call_operand.vmem [shape: f32[4,1], index: 4, kind: input, shape index: {}]   ;;  %s623_s5 = inlined_call_operand.vmem [shape: f32[2,12,256], index: 5, kind: output, shape index: {}]  }
   0x1   :  { %s570_s20 = smov 0  }
   0x2 LB: > { %s27_s21 = sadd.s32 1, %s528_s19  ;;  %p469_p0 = scmp.ge.s32.totalorder %s532_s20, 1  ;;  %s532_s20 = sphi %s570_s20, %s15_s20   ;;  %s528_s19 = sphi %s568_s19, %s625_s19   ;;  %s524_s18 = sphi %s566_s18, %s624_s18  }
   0x3   : > { %p29_p1 = scmp.ge.s32.totalorder %s27_s21, 2  ;;  %p208_p2 = scmp.lt.s32.totalorder %s532_s20, 3 }
   0x5   : > { %s627_s21 = smov (%p29_p1, %s27_s21), 0  ;;  %p209_p3 = pnand %p469_p0, %p208_p2 }
   0x6   : > { %v267_v0 = vld [vmem:[%s621_s3] sm:$0xf] (!%p209_p3)  ;;  %v534_v1 = vmov (!%p209_p3), 0   ;;  %v304_v4 = vld [vmem:[%s620_s2 + $0x8] sm:$0xf] (!%p209_p3)  ;;  %p245_p4 = scmp.lt.s32.totalorder (!%p209_p3), %s524_s18, 1  ;;  %v275_v7 = vlaneseq (!%p209_p3) }
   0x7   : > { %212 = sbr.rel (%p209_p3) target bundleno = 372 (0x174), region = 40  ;;  %507 = vset.pattern.permute.xlu0 (!%p209_p3), %v534_v1  ;;  %363 = vmatprep.mubr.bf16.mxu0 (!%p209_p3), %v534_v1  ;;  %v281_v2 = vld [vmem:[%s622_s4] sm:$0xf] (!%p209_p3)  ;;  %v535_v5 = vmov (!%p209_p3), 839922192   ;;  %vm324_vm0 = vcmask (!%p209_p3), 1041408  }
   0x8   : > { %270 = vperm.xlu0 (!%p209_p3), %507, %v267_v0   ;;  %508 = vset.pattern.permute.xlu1 (!%p209_p3), %v534_v1  ;;  %v303_v3 = vld [vmem:[%s620_s2] sm:$0xff] (!%p209_p3)  ;;  %v273_v6 = vunpack.c.l.s4 (!%p209_p3), %v535_v5  ;;  %v276_v9 = vshrl.u32 (!%p209_p3), %v275_v7, 7  ;;  %vm320_vm1 = vcmask (!%p209_p3), 31744  }
   0x9   : > { %307 = vperm.xlu1 (!%p209_p3), %508, %v303_v3   ;;  %v509_v24 = vld [vmem:[%s619_s1] sm:$0x3f] (!%p209_p3)  }
   0xa   : > { %v274_v8 = vunpack.c.0.s8 (!%p209_p3), %v273_v6 }
   0xc   : > { %284 = vperm.xlu0 (!%p209_p3), %507, %v281_v2   ;;  %v277_v10 = vsub.s32 (!%p209_p3), %v274_v8, %v276_v9 }
   0xd   : > { %312 = vperm.xlu1 (!%p209_p3), %508, %v304_v4  }
   0xe   : > { %s629_s18 = smov (!%p245_p4, %s524_s18), 1 }
   0xf   : > { %s479_s30 = sshll.u32 %s629_s18, 2  ;;  %s480_s11 = sshll.u32 %s629_s18, 5 }
  0x10   : > { %s252_s8 = scalar_lea.vmem %s618_s0, %s479_s30  ;;  %s262_s14 = scalar_lea.vmem %s623_s5, %s480_s11 }
  0x11   : > { %v265_v11 = vld [vmem:[%s252_s8] sm:$0xf] }
  0x12   : > { %v266_v13 = vunpack.c.l.bf16 %v265_v11 }
  0x87   : > { %v271_v12 = vpop.permute.xlu0 %270 }
  0x88   : > { %v278_v14 = vrot.slane %v271_v12, %v277_v10  ;;  %v308_v25 = vpop.permute.xlu1 %307 }
  0x8a   : > { %v280_v16 = vmul.f32 %v278_v14, %v266_v13 }
  0x8b   : > { %v285_v15 = vpop.permute.xlu0 %284 }
  0x8c   : > { %v292_v17 = vrot.slane %v285_v15, %v277_v10  ;;  %v313_v29 = vpop.permute.xlu1 %312 }
  0x8e   : > { %v294_v18 = vadd.f32 %v292_v17, %v280_v16 }
  0x90   : > { %v295_v19 = vmax.f32 %v294_v18, 0.0 }
  0x92   : > { %v297_v20 = vcombine.high %v295_v19, %v295_v19  ;;  %v299_v21 = vpack.c.bf16 %v295_v19, %v295_v19 }
  0x94   : > { %v300_v22 = vpack.c.bf16 %v297_v20, %v297_v20  ;;  %v326_v23 = vsel %vm324_vm0, %v299_v21, 0 }
  0x96   : > { %475 = vmatprep.subr.msk.bf16.mxu0 %vm324_vm0, %v300_v22 }
  0x97   : > { %332 = vmatpush1.bf16.msra.mxu0 %v326_v23 }
  0x9a   : > { %476 = vmatmul.mubr.msk.bf16.vlgmr.msra.gmra.mrb[0].mxu0 %vm320_vm1, %v509_v24 }
 0x16d   : > { %v365_v26 = vpop.f32.mrb[0].mxu0 }
 0x16e   : > { %v366_v27 = vadd.f32 %v365_v26, %v308_v25  ;;  %v367_v28 = vpop.f32.mrb[1].mxu0 }
 0x16f   : > { %v368_v30 = vadd.f32 %v367_v28, %v308_v25  ;;  %v369_v31 = vpop.f32.mrb[2].mxu0 }
 0x170   : > { %374 = vst [vmem:[%s262_s14] sm:$0xff] %v366_v27  ;;  %v370_v32 = vadd.f32 %v369_v31, %v313_v29  ;;  %v371_v33 = vpop.f32.mrb[3].mxu0 }
 0x171   : > { %375 = vst [vmem:[%s262_s14 + $0x8] sm:$0xff] %v368_v30  ;;  %v372_v34 = vadd.f32 %v371_v33, %v313_v29 }
 0x172   : > { %376 = vst [vmem:[%s262_s14 + $0x10] sm:$0xf] %v370_v32 }
 0x173   : > { %377 = vst [vmem:[%s262_s14 + $0x18] sm:$0xf] %v372_v34 }
 0x174 PF: > { %s15_s20 = sadd.s32 1, %s532_s20   ;;  %s624_s18 = smov %s528_s19 }
 0x175   : > { %p12_p5 = scmp.ge.s32.totalorder %s15_s20, 4   ;;  %s625_s19 = smov %s627_s21 }
 0x177   :  { %14 = sbr.rel (!%p12_p5) target bundleno = 2 (0x2), region = 70 }

// kernel: bottleneck_forward.11
= control target key start
LH: loop header
LB: loop body
LE: loop exit
PB: predicated region body
PF: predicated region fallthrough
CT: control target
= control target key end

     0   :  { %s1744_s15 = smov 0   ;;  %s1746_s16 = smov 0   ;;  %s2556_s0 = inlined_call_operand.vmem [shape: f32[2,2,2,256], index: 0, kind: input, shape index: {}]   ;;  %s2557_s1 = inlined_call_operand.vmem [shape: f32[2,9,2,2,256], index: 1, kind: input, shape index: {}]   ;;  %s2558_s2 = inlined_call_operand.vmem [shape: f32[2,9,2,2,256], index: 2, kind: input, shape index: {}]   ;;  %s2559_s3 = inlined_call_operand.vmem [shape: f32[9,2,2,256], index: 3, kind: input, shape index: {}]   ;;  %s2560_s4 = inlined_call_operand.vmem [shape: f32[2,2,2,256], index: 4, kind: output, shape index: {}]  }
   0x1   :  { %s1748_s17 = smov 0  }
   0x2 LB: > { %s26_s18 = sadd.s32 1, %s1712_s16  ;;  %p1557_p0 = scmp.ge.s32.totalorder %s1716_s17, 1  ;;  %s1716_s17 = sphi %s1748_s17, %s14_s17   ;;  %s1712_s16 = sphi %s1746_s16, %s2624_s16   ;;  %s1708_s15 = sphi %s1744_s15, %s2623_s15  }
   0x3   : > { %p28_p1 = scmp.ge.s32.totalorder %s26_s18, 2  ;;  %p228_p2 = scmp.lt.s32.totalorder %s1716_s17, 3 }
   0x5   : > { %s2626_s18 = smov (%p28_p1, %s26_s18), 0  ;;  %p229_p3 = pnand %p1557_p0, %p228_p2 }
   0x7   : > { %232 = sbr.rel (%p229_p3) target bundleno = 223 (0xdf), region = 36 }
   0xe   : > { %p286_p4 = scmp.lt.s32.totalorder %s1708_s15, 1  ;;  %v446_v0 = vlaneseq  ;;  %v371_v2 = vld [vmem:[%s2559_s3] sm:$0xf]  ;;  %v372_v4 = vld [vmem:[%s2559_s3 + $0x4] sm:$0xf]  ;;  %vm623_vm0 = vcmask 1041408  }
   0xf   : > { %v373_v5 = vld [vmem:[%s2559_s3 + $0x8] sm:$0xf]  ;;  %v374_v8 = vld [vmem:[%s2559_s3 + $0xc] sm:$0xf]  ;;  %v375_v9 = vld [vmem:[%s2559_s3 + $0x10] sm:$0xf] }
  0x10   : > { %s2628_s15 = smov (!%p286_p4, %s1708_s15), 1  ;;  %v376_v10 = vld [vmem:[%s2559_s3 + $0x14] sm:$0xf]  ;;  %v447_v11 = vshrl.u32 %v446_v0, 7  ;;  %v377_v14 = vld [vmem:[%s2559_s3 + $0x18] sm:$0xf] }
  0x11   : > { %s1586_s19 = sshll.u32 %s2628_s15, 3  ;;  %s1588_s20 = smul.u32 72, %s2628_s15  ;;  %v378_v15 = vld [vmem:[%s2559_s3 + $0x1c] sm:$0xf]  ;;  %v379_v19 = vld [vmem:[%s2559_s3 + $0x20] sm:$0xf] }
  0x12   : > { %s293_s23 = scalar_lea.vmem %s2556_s0, %s1586_s19  ;;  %v380_v20 = vld [vmem:[%s2559_s3 + $0x24] sm:$0xf]  ;;  %v381_v25 = vld [vmem:[%s2559_s3 + $0x28] sm:$0xf]  ;;  %v382_v26 = vld [vmem:[%s2559_s3 + $0x2c] sm:$0xf]  ;;  %s329_s28 = scalar_lea.vmem %s2560_s4, %s1586_s19 }
  0x13   : > { %s1776_s26 = scalar_lea.vmem %s2557_s1, %s1588_s20  ;;  %v331_v1 = vld [vmem:[%s293_s23] sm:$0xf]  ;;  %v332_v6 = vld [vmem:[%s293_s23 + $0x4] sm:$0xf]  ;;  %v383_v27 = vld [vmem:[%s2559_s3 + $0x30] sm:$0xf]  ;;  %s313_s25 = scalar_lea.vmem %s2558_s2, %s1588_s20 }
  0x14   : > { %v335_v3 = vld [vmem:[%s1776_s26] sm:$0xf]  ;;  %v336_v7 = vld [vmem:[%s1776_s26 + $0x4] sm:$0xf]  ;;  %v1798_v12 = vmul.f32 0.70710677, %v331_v1 }
  0x15   : > { %v337_v13 = vld [vmem:[%s1776_s26 + $0x8] sm:$0xf]  ;;  %v338_v16 = vld [vmem:[%s1776_s26 + $0xc] sm:$0xf]  ;;  %v339_v17 = vld [vmem:[%s1776_s26 + $0x10] sm:$0xf]  ;;  %v389_v21 = vadd.f32 %v371_v2, %v335_v3  ;;  %v390_v28 = vadd.f32 %v372_v4, %v336_v7 }
  0x16   : > { %v340_v18 = vld [vmem:[%s1776_s26 + $0x14] sm:$0xf]  ;;  %v1816_v22 = vmul.f32 0.70710677, %v332_v6  ;;  %v341_v23 = vld [vmem:[%s1776_s26 + $0x18] sm:$0xf]  ;;  %v391_v35 = vadd.f32 %v373_v5, %v337_v13  ;;  %v392_v39 = vadd.f32 %v374_v8, %v338_v16  ;;  %v393_v40 = vadd.f32 %v375_v9, %v339_v17 }
  0x17   : > { %v342_v24 = vld [vmem:[%s1776_s26 + $0x1c] sm:$0xf]  ;;  %v343_v29 = vld [vmem:[%s1776_s26 + $0x20] sm:$0xf]  ;;  %v344_v30 = vld [vmem:[%s1776_s26 + $0x24] sm:$0xf]  ;;  %v394_v41 = vadd.f32 %v376_v10, %v340_v18  ;;  %v395_v44 = vadd.f32 %v377_v14, %v341_v23  ;;  %v407_v46 = vmul.f32 %v389_v21, %v1798_v12 }
  0x18   : > { %v345_v31 = vld [vmem:[%s1776_s26 + $0x28] sm:$0xf]  ;;  %v384_v32 = vld [vmem:[%s2559_s3 + $0x34] sm:$0xf]  ;;  %v385_v33 = vld [vmem:[%s2559_s3 + $0x38] sm:$0xf]  ;;  %v396_v45 = vadd.f32 %v378_v15, %v342_v24  ;;  %v397_v49 = vadd.f32 %v379_v19, %v343_v29  ;;  %v398_v50 = vadd.f32 %v380_v20, %v344_v30  ;;  %v408_v51 = vmul.f32 %v390_v28, %v1816_v22 }
  0x19   : > { %v386_v34 = vld [vmem:[%s2559_s3 + $0x3c] sm:$0xf]  ;;  %v346_v36 = vld [vmem:[%s1776_s26 + $0x2c] sm:$0xf]  ;;  %v347_v37 = vld [vmem:[%s1776_s26 + $0x30] sm:$0xf]  ;;  %v399_v56 = vadd.f32 %v381_v25, %v345_v31  ;;  %v409_v59 = vmul.f32 %v391_v35, %v1798_v12  ;;  %v410_v1 = vmul.f32 %v392_v39, %v1816_v22  ;;  %v411_v2 = vmul.f32 %v393_v40, %v1798_v12 }
  0x1a   : > { %v348_v38 = vld [vmem:[%s1776_s26 + $0x34] sm:$0xf]  ;;  %v349_v42 = vld [vmem:[%s1776_s26 + $0x38] sm:$0xf]  ;;  %v350_v43 = vld [vmem:[%s1776_s26 + $0x3c] sm:$0xf]  ;;  %v400_v57 = vadd.f32 %v382_v26, %v346_v36  ;;  %v401_v58 = vadd.f32 %v383_v27, %v347_v37  ;;  %v412_v3 = vmul.f32 %v394_v41, %v1816_v22  ;;  %v413_v5 = vmul.f32 %v395_v44, %v1798_v12 }
  0x1b   : > { %v351_v47 = vld [vmem:[%s1776_s26 + $0x40] sm:$0xf]  ;;  %v1718_v52 = vmov 1983009808   ;;  %v352_v54 = vld [vmem:[%s1776_s26 + $0x44] sm:$0xf]  ;;  %v402_v60 = vadd.f32 %v384_v32, %v348_v38  ;;  %v403_v61 = vadd.f32 %v385_v33, %v349_v42  ;;  %v404_v62 = vadd.f32 %v386_v34, %v350_v43 }
  0x1c   : > { %v387_v48 = vld [vmem:[%s2559_s3 + $0x40] sm:$0xf]  ;;  %v444_v53 = vunpack.c.l.s4 %v1718_v52  ;;  %v388_v55 = vld [vmem:[%s2559_s3 + $0x44] sm:$0xf]  ;;  %v414_v6 = vmul.f32 %v396_v45, %v1816_v22  ;;  %v415_v8 = vmul.f32 %v397_v49, %v1798_v12  ;;  %v416_v9 = vmul.f32 %v398_v50, %v1816_v22 }
  0x1d   : > { %v405_v0 = vadd.f32 %v387_v48, %v351_v47  ;;  %v406_v4 = vadd.f32 %v388_v55, %v352_v54  ;;  %v417_v10 = vmul.f32 %v399_v56, %v1798_v12  ;;  %v418_v13 = vmul.f32 %v400_v57, %v1816_v22 }
  0x1e   : > { %v445_v63 = vunpack.c.0.s8 %v444_v53  ;;  %v419_v14 = vmul.f32 %v401_v58, %v1798_v12  ;;  %v420_v15 = vmul.f32 %v402_v60, %v1816_v22  ;;  %v422_v23 = vmul.f32 %v404_v62, %v1816_v22 }
  0x1f   : > { %v423_v26 = vmul.f32 %v405_v0, %v1798_v12  ;;  %v424_v27 = vmul.f32 %v406_v4, %v1816_v22 }
  0x20   : > { %v448_v7 = vsub.s32 %v445_v63, %v447_v11  ;;  %v421_v11 = vmul.f32 %v403_v61, %v1798_v12 }
  0x22   : > { %v449_v16 = vrot.slane %v407_v46, %v448_v7  ;;  %v457_v17 = vrot.slane %v408_v51, %v448_v7  ;;  %v465_v18 = vrot.slane %v409_v59, %v448_v7  ;;  %v473_v19 = vrot.slane %v410_v1, %v448_v7 }
  0x23   : > { %v1868_v20 = vrot.slane %v411_v2, %v448_v7  ;;  %v1870_v21 = vrot.slane %v412_v3, %v448_v7  ;;  %v1874_v24 = vrot.slane %v413_v5, %v448_v7  ;;  %v1876_v25 = vrot.slane %v414_v6, %v448_v7 }
  0x24   : > { %v450_v28 = vcombine.high %v449_v16, %v449_v16  ;;  %v458_v29 = vcombine.high %v457_v17, %v457_v17  ;;  %v1880_v30 = vrot.slane %v415_v8, %v448_v7  ;;  %v1882_v31 = vrot.slane %v416_v9, %v448_v7 }
  0x25   : > { %v1884_v32 = vrot.slane %v417_v10, %v448_v7  ;;  %v1886_v33 = vrot.slane %v418_v13, %v448_v7  ;;  %v466_v34 = vcombine.high %v465_v18, %v465_v18  ;;  %v474_v35 = vcombine.high %v473_v19, %v473_v19 }
  0x26   : > { %v482_v36 = vcombine.high %v1868_v20, %v1868_v20  ;;  %v490_v12 = vcombine.high %v1870_v21, %v1870_v21  ;;  %v498_v22 = vcombine.high %v1874_v24, %v1874_v24  ;;  %v506_v37 = vcombine.high %v1876_v25, %v1876_v25 }
  0x27   : > { %v1896_v38 = vrot.slane %v419_v14, %v448_v7  ;;  %v1898_v39 = vrot.slane %v420_v15, %v448_v7  ;;  %v514_v40 = vcombine.high %v1880_v30, %v1880_v30  ;;  %v522_v41 = vcombine.high %v1882_v31, %v1882_v31 }
  0x28   : > { %v1904_v42 = vrot.slane %v421_v11, %v448_v7  ;;  %v1906_v43 = vrot.slane %v422_v23, %v448_v7  ;;  %v530_v44 = vcombine.high %v1884_v32, %v1884_v32  ;;  %v538_v45 = vcombine.high %v1886_v33, %v1886_v33 }
  0x29   : > { %v624_v46 = vsel %vm623_vm0, %v449_v16, 0.0  ;;  %v631_v47 = vsel %vm623_vm0, %v450_v28, 0.0  ;;  %v638_v50 = vsel %vm623_vm0, %v457_v17, 0.0  ;;  %v645_v51 = vsel %vm623_vm0, %v458_v29, 0.0 }
  0x2a   : > { %v625_v48 = vrot.slane %v624_v46, 4  ;;  %v632_v49 = vrot.slane %v631_v47, 4  ;;  %v1916_v52 = vrot.slane %v423_v26, %v448_v7  ;;  %v1918_v53 = vrot.slane %v424_v27, %v448_v7 }
  0x2b   : > { %v639_v54 = vrot.slane %v638_v50, 4  ;;  %v646_v55 = vrot.slane %v645_v51, 4  ;;  %v652_v58 = vsel %vm623_vm0, %v465_v18, 0.0  ;;  %v659_v59 = vsel %vm623_vm0, %v466_v34, 0.0 }
  0x2c   : > { %v626_v56 = vadd.f32 %v625_v48, %v624_v46  ;;  %v633_v57 = vadd.f32 %v632_v49, %v631_v47  ;;  %v653_v62 = vrot.slane %v652_v58, 4  ;;  %v660_v63 = vrot.slane %v659_v59, 4 }
  0x2d   : > { %v640_v60 = vadd.f32 %v639_v54, %v638_v50  ;;  %v647_v61 = vadd.f32 %v646_v55, %v645_v51  ;;  %v666_v2 = vsel %vm623_vm0, %v473_v19, 0.0  ;;  %v673_v3 = vsel %vm623_vm0, %v474_v35, 0.0 }
  0x2e   : > { %v627_v0 = vrot.slane %v626_v56, 2  ;;  %v634_v1 = vrot.slane %v633_v57, 2  ;;  %v654_v6 = vadd.f32 %v653_v62, %v652_v58  ;;  %v661_v7 = vadd.f32 %v660_v63, %v659_v59 }
  0x2f   : > { %v641_v4 = vrot.slane %v640_v60, 2  ;;  %v648_v5 = vrot.slane %v647_v61, 2  ;;  %v667_v10 = vrot.slane %v666_v2, 4  ;;  %v674_v13 = vrot.slane %v673_v3, 4 }
  0x30   : > { %v628_v8 = vadd.f32 %v627_v0, %v626_v56  ;;  %v635_v9 = vadd.f32 %v634_v1, %v633_v57  ;;  %v655_v16 = vrot.slane %v654_v6, 2  ;;  %v662_v17 = vrot.slane %v661_v7, 2 }
  0x31   : > { %v1924_v14 = vadd.f32 %v641_v4, %v640_v60  ;;  %v1926_v15 = vadd.f32 %v648_v5, %v647_v61  ;;  %v546_v18 = vcombine.high %v1896_v38, %v1896_v38  ;;  %v554_v19 = vcombine.high %v1898_v39, %v1898_v39 }
  0x32   : > { %v668_v11 = vadd.f32 %v667_v10, %v666_v2  ;;  %v675_v23 = vadd.f32 %v674_v13, %v673_v3  ;;  %v562_v26 = vcombine.high %v1904_v42, %v1904_v42  ;;  %v570_v27 = vcombine.high %v1906_v43, %v1906_v43 }
  0x33   : > { %v629_v28 = vrot.slane %v628_v8, 1  ;;  %v636_v29 = vrot.slane %v635_v9, 1  ;;  %v656_v34 = vadd.f32 %v655_v16, %v654_v6  ;;  %v663_v35 = vadd.f32 %v662_v17, %v661_v7 }
  0x34   : > { %v669_v46 = vrot.slane %v668_v11, 2  ;;  %v676_v47 = vrot.slane %v675_v23, 2  ;;  %v578_v48 = vcombine.high %v1916_v52, %v1916_v52  ;;  %v643_v50 = vrot.slane %v1924_v14, 1 }
  0x35   : > { %v650_v51 = vrot.slane %v1926_v15, 1  ;;  %v680_v56 = vsel %vm623_vm0, %v1868_v20, 0.0  ;;  %v687_v57 = vsel %vm623_vm0, %v482_v36, 0.0  ;;  %v1948_v58 = vadd.f32 %v629_v28, %v628_v8 }
  0x36   : > { %v670_v54 = vadd.f32 %v669_v46, %v668_v11  ;;  %v677_v55 = vadd.f32 %v676_v47, %v675_v23  ;;  %v1950_v59 = vadd.f32 %v636_v29, %v635_v9  ;;  %v681_v60 = vrot.slane %v680_v56, 4 }
  0x37   : > { %v688_v61 = vrot.slane %v687_v57, 4  ;;  %v657_v62 = vrot.slane %v656_v34, 1  ;;  %v664_v63 = vrot.slane %v663_v35, 1  ;;  %v694_v0 = vsel %vm623_vm0, %v1870_v21, 0.0 }
  0x38   : > { %v701_v1 = vsel %vm623_vm0, %v490_v12, 0.0  ;;  %v682_v2 = vadd.f32 %v681_v60, %v680_v56  ;;  %v695_v3 = vrot.slane %v694_v0, 4  ;;  %v671_v4 = vrot.slane %v670_v54, 1 }
  0x39   : > { %v689_v20 = vadd.f32 %v688_v61, %v687_v57  ;;  %v702_v36 = vrot.slane %v701_v1, 4  ;;  %v678_v5 = vrot.slane %v677_v55, 1  ;;  %v708_v6 = vsel %vm623_vm0, %v1874_v24, 0.0 }
  0x3a   : > { %v715_v7 = vsel %vm623_vm0, %v498_v22, 0.0  ;;  %v683_v8 = vrot.slane %v682_v2, 2  ;;  %v696_v10 = vadd.f32 %v695_v3, %v694_v0  ;;  %v709_v13 = vrot.slane %v708_v6, 4 }
  0x3b   : > { %v690_v9 = vrot.slane %v689_v20, 2  ;;  %v703_v21 = vadd.f32 %v702_v36, %v701_v1  ;;  %v716_v12 = vrot.slane %v715_v7, 4  ;;  %v722_v16 = vsel %vm623_vm0, %v1876_v25, 0.0 }
  0x3c   : > { %v729_v17 = vsel %vm623_vm0, %v506_v37, 0.0  ;;  %v684_v11 = vadd.f32 %v683_v8, %v682_v2  ;;  %v697_v28 = vrot.slane %v696_v10, 2  ;;  %v710_v29 = vadd.f32 %v709_v13, %v708_v6 }
  0x3d   : > { %v691_v23 = vadd.f32 %v690_v9, %v689_v20  ;;  %v704_v24 = vrot.slane %v703_v21, 2  ;;  %v717_v22 = vadd.f32 %v716_v12, %v715_v7  ;;  %v723_v46 = vrot.slane %v722_v16, 4 }
  0x3e   : > { %v730_v47 = vrot.slane %v729_v17, 4  ;;  %v685_v56 = vrot.slane %v684_v11, 1  ;;  %v698_v60 = vadd.f32 %v697_v28, %v696_v10  ;;  %v711_v0 = vrot.slane %v710_v29, 2 }
  0x3f   : > { %v692_v57 = vrot.slane %v691_v23, 1  ;;  %v705_v61 = vadd.f32 %v704_v24, %v703_v21  ;;  %v718_v1 = vrot.slane %v717_v22, 2  ;;  %v724_v3 = vadd.f32 %v723_v46, %v722_v16 }
  0x40   : > { %v731_v36 = vadd.f32 %v730_v47, %v729_v17  ;;  %v1971_v25 = vadd.f32 %v643_v50, %v1924_v14  ;;  %v1974_v37 = vadd.f32 %v650_v51, %v1926_v15  ;;  %v1976_v2 = vadd.f32 %v657_v62, %v656_v34 }
  0x41   : > { %v1978_v20 = vadd.f32 %v664_v63, %v663_v35  ;;  %v699_v6 = vrot.slane %v698_v60, 1  ;;  %v706_v7 = vrot.slane %v705_v61, 1  ;;  %v712_v8 = vadd.f32 %v711_v0, %v710_v29 }
  0x42   : > { %v719_v9 = vadd.f32 %v718_v1, %v717_v22  ;;  %v1980_v10 = vadd.f32 %v671_v4, %v670_v54  ;;  %v1982_v21 = vadd.f32 %v678_v5, %v677_v55  ;;  %v736_v13 = vsel %vm623_vm0, %v1880_v30, 0.0 }
  0x43   : > { %v743_v14 = vsel %vm623_vm0, %v514_v40, 0.0  ;;  %v1990_v15 = vadd.f32 %v685_v56, %v684_v11  ;;  %v1992_v34 = vadd.f32 %v692_v57, %v691_v23  ;;  %v725_v35 = vrot.slane %v724_v3, 2 }
  0x44   : > { %v732_v50 = vrot.slane %v731_v36, 2  ;;  %v737_v51 = vrot.slane %v736_v13, 4  ;;  %v744_v62 = vrot.slane %v743_v14, 4  ;;  %v750_v54 = vsel %vm623_vm0, %v1882_v31, 0.0 }
  0x45   : > { %v757_v55 = vsel %vm623_vm0, %v522_v41, 0.0  ;;  %v2000_v63 = vadd.f32 %v699_v6, %v698_v60  ;;  %v2002_v30 = vadd.f32 %v706_v7, %v705_v61  ;;  %v713_v40 = vrot.slane %v712_v8, 1 }
  0x46   : > { %v720_v4 = vrot.slane %v719_v9, 1  ;;  %v738_v5 = vadd.f32 %v737_v51, %v736_v13  ;;  %v745_v12 = vadd.f32 %v744_v62, %v743_v14  ;;  %v751_v16 = vrot.slane %v750_v54, 4 }
  0x47   : > { %v758_v17 = vrot.slane %v757_v55, 4  ;;  %v726_v11 = vadd.f32 %v725_v35, %v724_v3  ;;  %v733_v23 = vadd.f32 %v732_v50, %v731_v36  ;;  %v764_v28 = vsel %vm623_vm0, %v1884_v32, 0.0 }
  0x48   : > { %v771_v31 = vsel %vm623_vm0, %v530_v44, 0.0  ;;  %v739_v41 = vrot.slane %v738_v5, 2  ;;  %v746_v24 = vrot.slane %v745_v12, 2  ;;  %v752_v29 = vadd.f32 %v751_v16, %v750_v54 }
  0x49   : > { %v759_v22 = vadd.f32 %v758_v17, %v757_v55  ;;  %v765_v46 = vrot.slane %v764_v28, 4  ;;  %v772_v47 = vrot.slane %v771_v31, 4  ;;  %v778_v56 = vsel %vm623_vm0, %v1886_v33, 0.0 }
  0x4a   : > { %v785_v57 = vsel %vm623_vm0, %v538_v45, 0.0  ;;  %v740_v60 = vadd.f32 %v739_v41, %v738_v5  ;;  %v747_v61 = vadd.f32 %v746_v24, %v745_v12  ;;  %v753_v0 = vrot.slane %v752_v29, 2 }
  0x4b   : > { %v760_v32 = vrot.slane %v759_v22, 2  ;;  %v766_v1 = vadd.f32 %v765_v46, %v764_v28  ;;  %v773_v44 = vadd.f32 %v772_v47, %v771_v31  ;;  %v779_v3 = vrot.slane %v778_v56, 4 }
  0x4c   : > { %v786_v36 = vrot.slane %v785_v57, 4  ;;  %v727_v6 = vrot.slane %v726_v11, 1  ;;  %v734_v7 = vrot.slane %v733_v23, 1  ;;  %v741_v13 = vrot.slane %v740_v60, 1 }
  0x4d   : > { %v748_v14 = vrot.slane %v747_v61, 1  ;;  %v767_v35 = vrot.slane %v766_v1, 2  ;;  %v774_v50 = vrot.slane %v773_v44, 2  ;;  %v780_v51 = vadd.f32 %v779_v3, %v778_v56 }
  0x4e   : > { %v787_v62 = vadd.f32 %v786_v36, %v785_v57  ;;  %v2016_v54 = vadd.f32 %v713_v40, %v712_v8  ;;  %v2018_v33 = vadd.f32 %v720_v4, %v719_v9  ;;  %v754_v45 = vadd.f32 %v753_v0, %v752_v29 }
  0x4f   : > { %v761_v55 = vadd.f32 %v760_v32, %v759_v22  ;;  %v768_v5 = vadd.f32 %v767_v35, %v766_v1  ;;  %v775_v12 = vadd.f32 %v774_v50, %v773_v44  ;;  %v781_v16 = vrot.slane %v780_v51, 2 }
  0x50   : > { %v788_v17 = vrot.slane %v787_v62, 2  ;;  %v2020_v28 = vadd.f32 %v727_v6, %v726_v11  ;;  %v2022_v31 = vadd.f32 %v734_v7, %v733_v23  ;;  %v792_v41 = vsel %vm623_vm0, %v1896_v38, 0.0 }
  0x51   : > { %v799_v8 = vsel %vm623_vm0, %v546_v18, 0.0  ;;  %v2030_v9 = vadd.f32 %v741_v13, %v740_v60  ;;  %v2032_v40 = vadd.f32 %v748_v14, %v747_v61  ;;  %v782_v4 = vadd.f32 %v781_v16, %v780_v51 }
  0x52   : > { %v789_v24 = vadd.f32 %v788_v17, %v787_v62  ;;  %v793_v29 = vrot.slane %v792_v41, 4  ;;  %v800_v22 = vrot.slane %v799_v8, 4  ;;  %v806_v11 = vsel %vm623_vm0, %v1898_v39, 0.0 }
  0x53   : > { %v813_v23 = vsel %vm623_vm0, %v554_v19, 0.0  ;;  %v755_v46 = vrot.slane %v754_v45, 1  ;;  %v762_v38 = vrot.slane %v761_v55, 1  ;;  %v769_v47 = vrot.slane %v768_v5, 1 }
  0x54   : > { %v776_v18 = vrot.slane %v775_v12, 1  ;;  %v794_v56 = vadd.f32 %v793_v29, %v792_v41  ;;  %v801_v57 = vadd.f32 %v800_v22, %v799_v8  ;;  %v807_v60 = vrot.slane %v806_v11, 4 }
  0x55   : > { %v814_v61 = vrot.slane %v813_v23, 4  ;;  %v783_v0 = vrot.slane %v782_v4, 1  ;;  %v790_v32 = vrot.slane %v789_v24, 1  ;;  %v820_v1 = vsel %vm623_vm0, %v1904_v42, 0.0 }
  0x56   : > { %v827_v39 = vsel %vm623_vm0, %v562_v26, 0.0  ;;  %v795_v44 = vrot.slane %v794_v56, 2  ;;  %v802_v19 = vrot.slane %v801_v57, 2  ;;  %v808_v3 = vadd.f32 %v807_v60, %v806_v11 }
  0x57   : > { %v815_v36 = vadd.f32 %v814_v61, %v813_v23  ;;  %v821_v6 = vrot.slane %v820_v1, 4  ;;  %v828_v7 = vrot.slane %v827_v39, 4  ;;  %v834_v13 = vsel %vm623_vm0, %v1906_v43, 0.0 }
  0x58   : > { %v841_v14 = vsel %vm623_vm0, %v570_v27, 0.0  ;;  %v796_v35 = vadd.f32 %v795_v44, %v794_v56  ;;  %v803_v50 = vadd.f32 %v802_v19, %v801_v57  ;;  %v809_v51 = vrot.slane %v808_v3, 2 }
  0x59   : > { %v816_v42 = vrot.slane %v815_v36, 2  ;;  %v822_v62 = vadd.f32 %v821_v6, %v820_v1  ;;  %v829_v26 = vadd.f32 %v828_v7, %v827_v39  ;;  %v835_v16 = vrot.slane %v834_v13, 4 }
  0x5a   : > { %v842_v17 = vrot.slane %v841_v14, 4  ;;  %v797_v41 = vrot.slane %v796_v35, 1  ;;  %v804_v8 = vrot.slane %v803_v50, 1  ;;  %v810_v29 = vadd.f32 %v809_v51, %v808_v3 }
  0x5b   : > { %v817_v22 = vadd.f32 %v816_v42, %v815_v36  ;;  %v823_v11 = vrot.slane %v822_v62, 2  ;;  %v830_v23 = vrot.slane %v829_v26, 2  ;;  %v836_v60 = vadd.f32 %v835_v16, %v834_v13 }
  0x5c   : > { %v843_v61 = vadd.f32 %v842_v17, %v841_v14  ;;  %v2052_v49 = vadd.f32 %v755_v46, %v754_v45  ;;  %v2054_v43 = vadd.f32 %v762_v38, %v761_v55  ;;  %v2056_v27 = vadd.f32 %v769_v47, %v768_v5 }
  0x5d   : > { %v2058_v56 = vadd.f32 %v776_v18, %v775_v12  ;;  %v811_v57 = vrot.slane %v810_v29, 1  ;;  %v818_v1 = vrot.slane %v817_v22, 1  ;;  %v837_v39 = vrot.slane %v836_v60, 2 }
  0x5e   : > { %v844_v44 = vrot.slane %v843_v61, 2  ;;  %v2060_v19 = vadd.f32 %v783_v0, %v782_v4  ;;  %v2062_v3 = vadd.f32 %v790_v32, %v789_v24  ;;  %v848_v36 = vsel %vm623_vm0, %v1916_v52, 0.0 }
  0x5f   : > { %v855_v45 = vsel %vm623_vm0, %v578_v48, 0.0  ;;  %v2070_v55 = vadd.f32 %v797_v41, %v796_v35  ;;  %v2072_v5 = vadd.f32 %v804_v8, %v803_v50  ;;  %v824_v12 = vadd.f32 %v823_v11, %v822_v62 }
  0x60   : > { %v831_v46 = vadd.f32 %v830_v23, %v829_v26  ;;  %v849_v38 = vrot.slane %v848_v36, 4  ;;  %v856_v47 = vrot.slane %v855_v45, 4  ;;  %v862_v4 = vsel %vm623_vm0, %v1918_v53, 0.0 }
  0x61   : > { %v2583_v24 = vcombine.high %v1918_v53, %v1918_v53  ;;  %v2080_v0 = vadd.f32 %v811_v57, %v810_v29  ;;  %v2082_v52 = vadd.f32 %v818_v1, %v817_v22  ;;  %v838_v48 = vadd.f32 %v837_v39, %v836_v60 }
  0x62   : > { %v845_v32 = vadd.f32 %v844_v44, %v843_v61  ;;  %v850_v6 = vadd.f32 %v849_v38, %v848_v36  ;;  %v857_v7 = vadd.f32 %v856_v47, %v855_v45  ;;  %v863_v13 = vrot.slane %v862_v4, 4 }
  0x63   : > { %v869_v18 = vsel %vm623_vm0, %v2583_v24, 0.0  ;;  %v825_v35 = vrot.slane %v824_v12, 1  ;;  %v832_v50 = vrot.slane %v831_v46, 1  ;;  %v876_v51 = vmax.f32 %v1948_v58, %v1976_v2 }
  0x64   : > { %v870_v14 = vrot.slane %v869_v18, 4  ;;  %v884_v53 = vmax.f32 %v1950_v59, %v1978_v20  ;;  %v851_v42 = vrot.slane %v850_v6, 2  ;;  %v858_v62 = vrot.slane %v857_v7, 2 }
  0x65   : > { %v864_v26 = vadd.f32 %v863_v13, %v862_v4  ;;  %v877_v17 = vmax.f32 %v876_v51, %v1990_v15  ;;  %v892_v8 = vmax.f32 %v1971_v25, %v1980_v10  ;;  %v900_v29 = vmax.f32 %v1974_v37, %v1982_v21 }
  0x66   : > { %v871_v16 = vadd.f32 %v870_v14, %v869_v18  ;;  %v885_v41 = vmax.f32 %v884_v53, %v1992_v34  ;;  %v839_v22 = vrot.slane %v838_v48, 1  ;;  %v846_v11 = vrot.slane %v845_v32, 1 }
  0x67   : > { %v865_v23 = vrot.slane %v864_v26, 2  ;;  %v878_v61 = vmax.f32 %v877_v17, %v2016_v54  ;;  %v893_v1 = vmax.f32 %v892_v8, %v2000_v63  ;;  %v901_v39 = vmax.f32 %v900_v29, %v2002_v30 }
  0x68   : > { %v872_v60 = vrot.slane %v871_v16, 2  ;;  %v886_v57 = vmax.f32 %v885_v41, %v2018_v33  ;;  %v852_v44 = vadd.f32 %v851_v42, %v850_v6  ;;  %v859_v36 = vadd.f32 %v858_v62, %v857_v7 }
  0x69   : > { %v866_v45 = vadd.f32 %v865_v23, %v864_v26  ;;  %v879_v47 = vmax.f32 %v878_v61, %v2030_v9  ;;  %v894_v24 = vmax.f32 %v893_v1, %v2020_v28  ;;  %v902_v18 = vmax.f32 %v901_v39, %v2022_v31 }
  0x6a   : > { %v873_v38 = vadd.f32 %v872_v60, %v871_v16  ;;  %v887_v4 = vmax.f32 %v886_v57, %v2032_v40  ;;  %v2102_v13 = vadd.f32 %v825_v35, %v824_v12  ;;  %v2104_v14 = vadd.f32 %v832_v50, %v831_v46 }
  0x6b   : > { %v2106_v51 = vadd.f32 %v839_v22, %v838_v48  ;;  %v2108_v53 = vadd.f32 %v846_v11, %v845_v32  ;;  %v880_v6 = vmax.f32 %v879_v47, %v2056_v27  ;;  %v895_v42 = vmax.f32 %v894_v24, %v2052_v49 }
  0x6c   : > { %v888_v7 = vmax.f32 %v887_v4, %v2058_v56  ;;  %v903_v62 = vmax.f32 %v902_v18, %v2054_v43  ;;  %v853_v26 = vrot.slane %v852_v44, 1  ;;  %v860_v16 = vrot.slane %v859_v36, 1 }
  0x6d   : > { %v867_v17 = vrot.slane %v866_v45, 1  ;;  %v874_v41 = vrot.slane %v873_v38, 1  ;;  %v881_v12 = vmax.f32 %v880_v6, %v2070_v55  ;;  %v896_v48 = vmax.f32 %v895_v42, %v2060_v19 }
  0x6e   : > { %v889_v46 = vmax.f32 %v888_v7, %v2072_v5  ;;  %v904_v32 = vmax.f32 %v903_v62, %v2062_v3  ;;  %v2120_v8 = vadd.f32 %v853_v26, %v852_v44  ;;  %v2122_v29 = vadd.f32 %v860_v16, %v859_v36 }
  0x6f   : > { %v897_v35 = vmax.f32 %v896_v48, %v2080_v0  ;;  %v882_v22 = vmax.f32 %v881_v12, %v2102_v13  ;;  %v2126_v23 = vadd.f32 %v867_v17, %v866_v45  ;;  %v2128_v60 = vadd.f32 %v874_v41, %v873_v38 }
  0x70   : > { %v905_v50 = vmax.f32 %v904_v32, %v2082_v52  ;;  %v890_v11 = vmax.f32 %v889_v46, %v2104_v14 }
  0x71   : > { %v898_v61 = vmax.f32 %v897_v35, %v2106_v51  ;;  %v2133_v1 = vmax.f32 %v882_v22, %v2120_v8 }
  0x72   : > { %v906_v57 = vmax.f32 %v905_v50, %v2108_v53  ;;  %v2136_v39 = vmax.f32 %v890_v11, %v2122_v29 }
  0x73   : > { %v2139_v44 = vmax.f32 %v898_v61, %v2126_v23  ;;  %v908_v45 = vsub.f32 %v1948_v58, %v2133_v1  ;;  %v912_v24 = vsub.f32 %v1976_v2, %v2133_v1 }
  0x74   : > { %v2142_v36 = vmax.f32 %v906_v57, %v2128_v60  ;;  %v909_v38 = vsub.f32 %v1950_v59, %v2136_v39  ;;  %v913_v18 = vsub.f32 %v1978_v20, %v2136_v39  ;;  %v917_v2 = vsub.f32 %v1992_v34, %v2136_v39 }
  0x75   : > { %v910_v47 = vsub.f32 %v1971_v25, %v2139_v44  ;;  %v914_v6 = vsub.f32 %v1980_v10, %v2139_v44  ;;  %v944_v7 = vmul.f32 1.442695, %v908_v45  ;;  %v916_v25 = vsub.f32 %v1990_v15, %v2133_v1 }
  0x76   : > { %v911_v4 = vsub.f32 %v1974_v37, %v2142_v36  ;;  %v946_v58 = vmul.f32 1.442695, %v909_v38  ;;  %v915_v59 = vsub.f32 %v1982_v21, %v2142_v36  ;;  %v952_v37 = vmul.f32 1.442695, %v912_v24 }
  0x77   : > { %v948_v42 = vmul.f32 1.442695, %v910_v47  ;;  %1614 = vpow2.f32 %v944_v7  ;;  %v954_v20 = vmul.f32 1.442695, %v913_v18  ;;  %v918_v10 = vsub.f32 %v2000_v63, %v2139_v44 }
  0x78   : > { %v950_v62 = vmul.f32 1.442695, %v911_v4  ;;  %1616 = vpow2.f32 %v946_v58  ;;  %v956_v26 = vmul.f32 1.442695, %v914_v6  ;;  %v919_v21 = vsub.f32 %v2002_v30, %v2142_v36 }
  0x79   : > { %1618 = vpow2.f32 %v948_v42  ;;  %v958_v16 = vmul.f32 1.442695, %v915_v59  ;;  %v920_v15 = vsub.f32 %v2016_v54, %v2133_v1  ;;  %v960_v17 = vmul.f32 1.442695, %v916_v25 }
  0x7a   : > { %1620 = vpow2.f32 %v950_v62  ;;  %v921_v34 = vsub.f32 %v2018_v33, %v2136_v39  ;;  %v962_v41 = vmul.f32 1.442695, %v917_v2  ;;  %v922_v63 = vsub.f32 %v2020_v28, %v2139_v44 }
  0x7b   : > { %1622 = vpow2.f32 %v952_v37  ;;  %v964_v12 = vmul.f32 1.442695, %v918_v10  ;;  %v923_v30 = vsub.f32 %v2022_v31, %v2142_v36  ;;  %v966_v46 = vmul.f32 1.442695, %v919_v21 }
  0x7c   : > { %1624 = vpow2.f32 %v954_v20  ;;  %v924_v54 = vsub.f32 %v2030_v9, %v2133_v1  ;;  %v968_v48 = vmul.f32 1.442695, %v920_v15  ;;  %v925_v33 = vsub.f32 %v2032_v40, %v2136_v39 }
  0x7d   : > { %1626 = vpow2.f32 %v956_v26  ;;  %v970_v32 = vmul.f32 1.442695, %v921_v34  ;;  %v926_v28 = vsub.f32 %v2052_v49, %v2139_v44  ;;  %v972_v50 = vmul.f32 1.442695, %v922_v63 }
  0x7e   : > { %1628 = vpow2.f32 %v958_v16  ;;  %v927_v22 = vsub.f32 %v2054_v43, %v2142_v36  ;;  %v974_v9 = vmul.f32 1.442695, %v923_v30  ;;  %v928_v40 = vsub.f32 %v2056_v27, %v2133_v1 }
  0x7f   : > { %1630 = vpow2.f32 %v960_v17  ;;  %v976_v61 = vmul.f32 1.442695, %v924_v54  ;;  %v929_v49 = vsub.f32 %v2058_v56, %v2136_v39  ;;  %v978_v45 = vmul.f32 1.442695, %v925_v33 }
  0x80   : > { %1632 = vpow2.f32 %v962_v41  ;;  %v930_v43 = vsub.f32 %v2060_v19, %v2139_v44  ;;  %v980_v47 = vmul.f32 1.442695, %v926_v28  ;;  %v931_v27 = vsub.f32 %v2062_v3, %v2142_v36 }
  0x81   : > { %v2180_v35 = vpop.eup %1614  ;;  %1634 = vpow2.f32 %v964_v12  ;;  %v982_v24 = vmul.f32 1.442695, %v927_v22  ;;  %v932_v6 = vsub.f32 %v2070_v55, %v2133_v1  ;;  %v984_v7 = vmul.f32 1.442695, %v928_v40 }
  0x82   : > { %v2184_v31 = vpop.eup %1616  ;;  %1636 = vpow2.f32 %v966_v46  ;;  %v933_v3 = vsub.f32 %v2072_v5, %v2136_v39  ;;  %v986_v59 = vmul.f32 1.442695, %v929_v49  ;;  %v934_v55 = vsub.f32 %v2080_v0, %v2139_v44 }
  0x83   : > { %v2188_v11 = vpop.eup %1618  ;;  %1638 = vpow2.f32 %v968_v48  ;;  %v988_v25 = vmul.f32 1.442695, %v930_v43  ;;  %v935_v5 = vsub.f32 %v2082_v52, %v2142_v36  ;;  %v990_v20 = vmul.f32 1.442695, %v931_v27 }
  0x84   : > { %v2192_v57 = vpop.eup %1620  ;;  %1640 = vpow2.f32 %v970_v32  ;;  %v936_v21 = vsub.f32 %v2102_v13, %v2133_v1  ;;  %v992_v0 = vmul.f32 1.442695, %v932_v6  ;;  %v937_v17 = vsub.f32 %v2104_v14, %v2136_v39 }
  0x85   : > { %v2196_v38 = vpop.eup %1622  ;;  %1642 = vpow2.f32 %v972_v50  ;;  %v994_v52 = vmul.f32 1.442695, %v933_v3  ;;  %v938_v63 = vsub.f32 %v2106_v51, %v2139_v44  ;;  %v996_v13 = vmul.f32 1.442695, %v934_v55 }
  0x86   : > { %v2200_v4 = vpop.eup %1624  ;;  %1644 = vpow2.f32 %v974_v9  ;;  %v1016_v18 = vadd.f32 %v2196_v38, %v2180_v35  ;;  %v939_v46 = vsub.f32 %v2108_v53, %v2142_v36  ;;  %v998_v14 = vmul.f32 1.442695, %v935_v5 }
  0x87   : > { %v2206_v56 = vpop.eup %1626  ;;  %1646 = vpow2.f32 %v976_v61  ;;  %v1024_v19 = vadd.f32 %v2200_v4, %v2184_v31  ;;  %v940_v33 = vsub.f32 %v2120_v8, %v2133_v1  ;;  %v1000_v51 = vmul.f32 1.442695, %v936_v21 }
  0x88   : > { %v2212_v58 = vpop.eup %1628  ;;  %1648 = vpow2.f32 %v978_v45  ;;  %v1032_v42 = vadd.f32 %v2206_v56, %v2188_v11  ;;  %v941_v50 = vsub.f32 %v2122_v29, %v2136_v39  ;;  %v1002_v53 = vmul.f32 1.442695, %v937_v17 }
  0x89   : > { %v2218_v62 = vpop.eup %1630  ;;  %1650 = vpow2.f32 %v980_v47  ;;  %v1040_v37 = vadd.f32 %v2212_v58, %v2192_v57  ;;  %v942_v40 = vsub.f32 %v2126_v23, %v2139_v44  ;;  %v1004_v8 = vmul.f32 1.442695, %v938_v63 }
  0x8a   : > { %v2224_v2 = vpop.eup %1632  ;;  %1652 = vpow2.f32 %v982_v24  ;;  %v1017_v10 = vadd.f32 %v2218_v62, %v1016_v18  ;;  %v943_v49 = vsub.f32 %v2128_v60, %v2142_v36  ;;  %v1006_v29 = vmul.f32 1.442695, %v939_v46 }
  0x8b   : > { %v2229_v26 = vpop.eup %1634  ;;  %1654 = vpow2.f32 %v984_v7  ;;  %v1025_v16 = vadd.f32 %v2224_v2, %v1024_v19  ;;  %v1008_v43 = vmul.f32 1.442695, %v940_v33  ;;  %v1010_v44 = vmul.f32 1.442695, %v941_v50 }
  0x8c   : > { %v2234_v15 = vpop.eup %1636  ;;  %1656 = vpow2.f32 %v986_v59  ;;  %v1033_v34 = vadd.f32 %v2229_v26, %v1032_v42  ;;  %v1012_v60 = vmul.f32 1.442695, %v942_v40  ;;  %v1014_v6 = vmul.f32 1.442695, %v943_v49 }
  0x8d   : > { %v2239_v41 = vpop.eup %1638  ;;  %1658 = vpow2.f32 %v988_v25  ;;  %v1041_v12 = vadd.f32 %v2234_v15, %v1040_v37  ;;  %v2333_v49 = vld.sshfl [vmem:[%s313_s25 + $0x8] sm:$0x33 pattern:$0x76325410] }
  0x8e   : > { %v2244_v30 = vpop.eup %1640  ;;  %1660 = vpow2.f32 %v990_v20  ;;  %v1018_v54 = vadd.f32 %v2239_v41, %v1017_v10  ;;  %2585 = vst [vmem:[#allocation3_spill] sm:$0xff] %v2333_v49 }
  0x8f   : > { %v2249_v48 = vpop.eup %1642  ;;  %1662 = vpow2.f32 %v992_v0  ;;  %v1026_v32 = vadd.f32 %v2244_v30, %v1025_v16 }
  0x90   : > { %v2254_v28 = vpop.eup %1644  ;;  %1664 = vpow2.f32 %v994_v52  ;;  %v1034_v22 = vadd.f32 %v2249_v48, %v1033_v34 }
  0x91   : > { %v2259_v9 = vpop.eup %1646  ;;  %1666 = vpow2.f32 %v996_v13  ;;  %v1042_v1 = vadd.f32 %v2254_v28, %v1041_v12 }
  0x92   : > { %v2264_v61 = vpop.eup %1648  ;;  %1668 = vpow2.f32 %v998_v14  ;;  %v1019_v39 = vadd.f32 %v2259_v9, %v1018_v54 }
  0x93   : > { %v2269_v45 = vpop.eup %1650  ;;  %1670 = vpow2.f32 %v1000_v51  ;;  %v1027_v47 = vadd.f32 %v2264_v61, %v1026_v32 }
  0x94   : > { %v2272_v23 = vpop.eup %1652  ;;  %1672 = vpow2.f32 %v1002_v53  ;;  %v1035_v27 = vadd.f32 %v2269_v45, %v1034_v22 }
  0x95   : > { %v2275_v24 = vpop.eup %1654  ;;  %1674 = vpow2.f32 %v1004_v8  ;;  %v1043_v36 = vadd.f32 %v2272_v23, %v1042_v1  ;;  %v2329_v8 = vld.sshfl [vmem:[%s313_s25] sm:$0x33 pattern:$0x76325410] }
  0x96   : > { %v2278_v18 = vpop.eup %1656  ;;  %1676 = vpow2.f32 %v1006_v29  ;;  %v1020_v7 = vadd.f32 %v2275_v24, %v1019_v39  ;;  %v2331_v1 = vld.sshfl [vmem:[%s313_s25 + $0x4] sm:$0x33 pattern:$0x76325410] }
  0x97   : > { %v2281_v19 = vpop.eup %1658  ;;  %1678 = vpow2.f32 %v1008_v43  ;;  %v1028_v3 = vadd.f32 %v2278_v18, %v1027_v47  ;;  %2584 = vst [vmem:[#allocation2_spill] sm:$0xff] %v2331_v1  ;;  %v2335_v29 = vld.sshfl [vmem:[%s313_s25 + $0xc] sm:$0x33 pattern:$0x76325410] }
  0x98   : > { %v2284_v59 = vpop.eup %1660  ;;  %1680 = vpow2.f32 %v1010_v44  ;;  %v1036_v42 = vadd.f32 %v2281_v19, %v1035_v27  ;;  %2586 = vst [vmem:[#allocation4_spill] sm:$0xff] %v2335_v29  ;;  %v2337_v39 = vld.sshfl [vmem:[%s313_s25 + $0x10] sm:$0x33 pattern:$0x76325410] }
  0x99   : > { %v2287_v55 = vpop.eup %1662  ;;  %1682 = vpow2.f32 %v1012_v60  ;;  %v1044_v25 = vadd.f32 %v2284_v59, %v1043_v36  ;;  %2587 = vst [vmem:[#allocation5_spill] sm:$0xff] %v2337_v39  ;;  %v2339_v43 = vld.sshfl [vmem:[%s313_s25 + $0x14] sm:$0x33 pattern:$0x76325410] }
  0x9a   : > { %v2290_v37 = vpop.eup %1664  ;;  %1684 = vpow2.f32 %v1014_v6  ;;  %v1021_v5 = vadd.f32 %v2287_v55, %v1020_v7  ;;  %v2341_v47 = vld.sshfl [vmem:[%s313_s25 + $0x18] sm:$0x33 pattern:$0x76325410] }
  0x9b   : > { %v2293_v20 = vpop.eup %1666  ;;  %v1029_v10 = vadd.f32 %v2290_v37, %v1028_v3  ;;  %2588 = vst [vmem:[#allocation6_spill] sm:$0xff] %v2341_v47  ;;  %v2343_v44 = vld.sshfl [vmem:[%s313_s25 + $0x1c] sm:$0x33 pattern:$0x76325410] }
  0x9c   : > { %v2296_v21 = vpop.eup %1668  ;;  %v1037_v0 = vadd.f32 %v2293_v20, %v1036_v42  ;;  %v2345_v27 = vld.sshfl [vmem:[%s313_s25 + $0x20] sm:$0x33 pattern:$0x76325410] }
  0x9d   : > { %v2299_v16 = vpop.eup %1670  ;;  %v1045_v17 = vadd.f32 %v2296_v21, %v1044_v25  ;;  %2589 = vst [vmem:[#allocation7_spill] sm:$0xff] %v2345_v27  ;;  %v2347_v60 = vld.sshfl [vmem:[%s313_s25 + $0x24] sm:$0x33 pattern:$0x76325410] }
  0x9e   : > { %v2302_v52 = vpop.eup %1672  ;;  %v1022_v34 = vadd.f32 %v2299_v16, %v1021_v5  ;;  %v2349_v36 = vld.sshfl [vmem:[%s313_s25 + $0x28] sm:$0x33 pattern:$0x76325410] }
  0x9f   : > { %v2305_v63 = vpop.eup %1674  ;;  %v1030_v13 = vadd.f32 %v2302_v52, %v1029_v10  ;;  %v2351_v6 = vld.sshfl [vmem:[%s313_s25 + $0x2c] sm:$0x33 pattern:$0x76325410]  ;;  %v1113_v10 = vcombine.high %v2329_v8, %v2329_v8 }
  0xa0   : > { %v2308_v12 = vpop.eup %1676  ;;  %v1038_v46 = vadd.f32 %v2305_v63, %v1037_v0  ;;  %2590 = vst [vmem:[#allocation8_spill] sm:$0xff] %v2351_v6  ;;  %v2353_v7 = vld.sshfl [vmem:[%s313_s25 + $0x30] sm:$0x33 pattern:$0x76325410]  ;;  %v1121_v0 = vcombine.high %v2331_v1, %v2331_v1 }
  0xa1   : > { %v2311_v14 = vpop.eup %1678  ;;  %v1046_v54 = vadd.f32 %v2308_v12, %v1045_v17  ;;  %2591 = vst [vmem:[#allocation9_spill] sm:$0xff] %v2353_v7  ;;  %v2355_v3 = vld.sshfl [vmem:[%s313_s25 + $0x34] sm:$0x33 pattern:$0x76325410]  ;;  %v1129_v17 = vcombine.high %v2333_v49, %v2333_v49 }
  0xa2   : > { %v2314_v33 = vpop.eup %1680  ;;  %v1023_v51 = vadd.f32 %v2311_v14, %v1022_v34  ;;  %2592 = vst [vmem:[#allocation10_spill] sm:$0xff] %v2355_v3  ;;  %v2357_v42 = vld.sshfl [vmem:[%s313_s25 + $0x38] sm:$0x33 pattern:$0x76325410] }
  0xa3   : > { %v2317_v32 = vpop.eup %1682  ;;  %v1031_v50 = vadd.f32 %v2314_v33, %v1030_v13  ;;  %2593 = vst [vmem:[#allocation11_spill] sm:$0xff] %v2357_v42  ;;  %v2359_v25 = vld.sshfl [vmem:[%s313_s25 + $0x3c] sm:$0x33 pattern:$0x76325410] }
  0xa4   : > { %v2320_v53 = vpop.eup %1684  ;;  %v1039_v22 = vadd.f32 %v2317_v32, %v1038_v46  ;;  %1686 = vrcp.f32 %v1023_v51  ;;  %2594 = vst [vmem:[#allocation12_spill] sm:$0xff] %v2359_v25  ;;  %v2361_v5 = vld.sshfl [vmem:[%s313_s25 + $0x40] sm:$0x33 pattern:$0x76325410]  ;;  %v1137_v46 = vcombine.high %v2335_v29, %v2335_v29 }
  0xa5   : > { %v1047_v40 = vadd.f32 %v2320_v53, %v1046_v54  ;;  %1688 = vrcp.f32 %v1031_v50  ;;  %2595 = vst [vmem:[#allocation13_spill] sm:$0xff] %v2361_v5  ;;  %v2369_v13 = vld.sshfl [vmem:[%s313_s25 + $0x44] sm:$0x33 pattern:$0x76325410]  ;;  %v1145_v54 = vcombine.high %v2337_v39, %v2337_v39  ;;  %v2598_v5 = vld [vmem:[#allocation3_spill] sm:$0xff] }
  0xa6   : > { %1690 = vrcp.f32 %v1039_v22  ;;  %2596 = vst [vmem:[#allocation14_spill] sm:$0xff] %v2369_v13 }
  0xa7   : > { %1692 = vrcp.f32 %v1047_v40 }
  0xae   : > { %v1687_v34 = vpop.eup %1686 }
  0xaf   : > { %v1689_v22 = vpop.eup %1688  ;;  %v1052_v27 = vmul.f32 %v1687_v34, %v2180_v35  ;;  %v1056_v7 = vmul.f32 %v1687_v34, %v2196_v38  ;;  %v1060_v47 = vmul.f32 %v1687_v34, %v2218_v62  ;;  %v1064_v40 = vmul.f32 %v1687_v34, %v2239_v41 }
  0xb0   : > { %v1691_v39 = vpop.eup %1690  ;;  %v1053_v50 = vmul.f32 %v1689_v22, %v2184_v31  ;;  %v1057_v35 = vmul.f32 %v1689_v22, %v2200_v4  ;;  %v1061_v1 = vmul.f32 %v1689_v22, %v2224_v2  ;;  %v1065_v25 = vmul.f32 %v1689_v22, %v2244_v30 }
  0xb1   : > { %v1693_v49 = vpop.eup %1692  ;;  %v1054_v42 = vmul.f32 %v1691_v39, %v2188_v11  ;;  %v1058_v51 = vmul.f32 %v1691_v39, %v2206_v56  ;;  %v1062_v31 = vmul.f32 %v1691_v39, %v2229_v26  ;;  %v1066_v38 = vmul.f32 %v1691_v39, %v2249_v48 }
  0xb2   : > { %v1055_v29 = vmul.f32 %v1693_v49, %v2192_v57  ;;  %v1059_v62 = vmul.f32 %v1693_v49, %v2212_v58  ;;  %v1063_v41 = vmul.f32 %v1693_v49, %v2234_v15  ;;  %v1067_v11 = vmul.f32 %v1693_v49, %v2254_v28 }
  0xb3   : > { %v1068_v4 = vmul.f32 %v1687_v34, %v2259_v9  ;;  %v1069_v2 = vmul.f32 %v1689_v22, %v2264_v61  ;;  %v1070_v30 = vmul.f32 %v1691_v39, %v2269_v45  ;;  %v1071_v57 = vmul.f32 %v1693_v49, %v2272_v23 }
  0xb4   : > { %v1072_v56 = vmul.f32 %v1687_v34, %v2275_v24  ;;  %v1073_v26 = vmul.f32 %v1689_v22, %v2278_v18  ;;  %v1074_v48 = vmul.f32 %v1691_v39, %v2281_v19  ;;  %v1075_v58 = vmul.f32 %v1693_v49, %v2284_v59 }
  0xb5   : > { %v1076_v15 = vmul.f32 %v1687_v34, %v2287_v55  ;;  %v1077_v28 = vmul.f32 %v1689_v22, %v2290_v37  ;;  %v1078_v9 = vmul.f32 %v1691_v39, %v2293_v20  ;;  %v1079_v61 = vmul.f32 %v1693_v49, %v2296_v21 }
  0xb6   : > { %v1080_v45 = vmul.f32 %v1687_v34, %v2299_v16  ;;  %v1081_v23 = vmul.f32 %v1689_v22, %v2302_v52  ;;  %v1082_v24 = vmul.f32 %v1691_v39, %v2305_v63  ;;  %v1083_v18 = vmul.f32 %v1693_v49, %v2308_v12  ;;  %v2597_v16 = vld [vmem:[#allocation2_spill] sm:$0xff]  ;;  %v2599_v12 = vld [vmem:[#allocation4_spill] sm:$0xff] }
  0xb7   : > { %v1084_v19 = vmul.f32 %v1687_v34, %v2311_v14  ;;  %v1085_v59 = vmul.f32 %v1689_v22, %v2314_v33  ;;  %v2436_v55 = vmul.f32 %v1691_v39, %v2317_v32  ;;  %v2439_v37 = vmul.f32 %v1693_v49, %v2320_v53  ;;  %v2600_v34 = vld [vmem:[#allocation5_spill] sm:$0xff] }
  0xb8   : > { %v1286_v20 = vmul.f32 %v2329_v8, %v1052_v27  ;;  %v1287_v21 = vmul.f32 %v1113_v10, %v1053_v50  ;;  %v1288_v13 = vmul.f32 %v2597_v16, %v1054_v42  ;;  %v1289_v52 = vmul.f32 %v1121_v0, %v1055_v29  ;;  %v2602_v8 = vld [vmem:[#allocation6_spill] sm:$0xff] }
  0xb9   : > { %v1290_v63 = vmul.f32 %v2598_v5, %v1056_v7  ;;  %v1291_v3 = vmul.f32 %v1129_v17, %v1057_v35  ;;  %v1292_v6 = vmul.f32 %v2599_v12, %v1058_v51  ;;  %v1293_v14 = vmul.f32 %v1137_v46, %v1059_v62 }
  0xba   : > { %v1294_v33 = vmul.f32 %v2600_v34, %v1060_v47  ;;  %v1295_v22 = vmul.f32 %v1145_v54, %v1061_v1  ;;  %v1296_v32 = vmul.f32 %v2339_v43, %v1062_v31  ;;  %v2601_v53 = vcombine.high %v2339_v43, %v2339_v43  ;;  %v2605_v47 = vld [vmem:[#allocation7_spill] sm:$0xff]  ;;  %v2611_v31 = vld [vmem:[#allocation9_spill] sm:$0xff] }
  0xbb   : > { %v1298_v39 = vmul.f32 %v2602_v8, %v1064_v40  ;;  %v2603_v29 = vcombine.high %v2602_v8, %v2602_v8  ;;  %v1300_v7 = vmul.f32 %v2343_v44, %v1066_v38  ;;  %v2604_v42 = vcombine.high %v2343_v44, %v2343_v44  ;;  %v2609_v44 = vld [vmem:[#allocation8_spill] sm:$0xff] }
  0xbc   : > { %v1297_v49 = vmul.f32 %v2601_v53, %v1063_v41  ;;  %v1302_v1 = vmul.f32 %v2605_v47, %v1068_v4  ;;  %v2606_v10 = vcombine.high %v2605_v47, %v2605_v47  ;;  %v1304_v43 = vmul.f32 %v2347_v60, %v1070_v30  ;;  %v2613_v4 = vld [vmem:[#allocation10_spill] sm:$0xff]  ;;  %v2619_v53 = vld [vmem:[#allocation13_spill] sm:$0xff] }
  0xbd   : > { %v1299_v27 = vmul.f32 %v2603_v29, %v1065_v25  ;;  %v1301_v5 = vmul.f32 %v2604_v42, %v1067_v11  ;;  %v2607_v17 = vcombine.high %v2347_v60, %v2347_v60  ;;  %v1306_v25 = vmul.f32 %v2349_v36, %v1072_v56  ;;  %v2615_v56 = vld [vmem:[#allocation11_spill] sm:$0xff] }
  0xbe   : > { %v1303_v0 = vmul.f32 %v2606_v10, %v1069_v2  ;;  %v2608_v54 = vcombine.high %v2349_v36, %v2349_v36  ;;  %v1308_v50 = vmul.f32 %v2609_v44, %v1074_v48  ;;  %v2610_v40 = vcombine.high %v2609_v44, %v2609_v44 }
  0xbf   : > { %v1305_v46 = vmul.f32 %v2607_v17, %v1071_v57  ;;  %v1310_v38 = vmul.f32 %v2611_v31, %v1076_v15  ;;  %v2612_v62 = vcombine.high %v2611_v31, %v2611_v31  ;;  %v1322_v41 = vsel %vm623_vm0, %v1286_v20, 0.0 }
  0xc0   : > { %v1307_v51 = vmul.f32 %v2608_v54, %v1073_v26  ;;  %v2474_v35 = vmul.f32 %v2610_v40, %v1075_v58  ;;  %v1323_v11 = vsel %vm623_vm0, %v1290_v63, 0.0  ;;  %v1325_v36 = vsel %vm623_vm0, %v1294_v33, 0.0  ;;  %v2617_v63 = vld [vmem:[#allocation12_spill] sm:$0xff] }
  0xc1   : > { %v1311_v60 = vmul.f32 %v2612_v62, %v1077_v28  ;;  %v1312_v2 = vmul.f32 %v2613_v4, %v1078_v9  ;;  %v2614_v30 = vcombine.high %v2613_v4, %v2613_v4  ;;  %v1314_v26 = vmul.f32 %v2615_v56, %v1080_v45 }
  0xc2   : > { %v1324_v48 = vadd.f32 %v1323_v11, %v1322_v41  ;;  %v2616_v58 = vcombine.high %v2615_v56, %v2615_v56  ;;  %v1327_v28 = vsel %vm623_vm0, %v1298_v39, 0.0  ;;  %v1339_v20 = vsel %vm623_vm0, %v1287_v21, 0.0 }
  0xc3   : > { %v2487_v57 = vmul.f32 %v2614_v30, %v1079_v61  ;;  %v1340_v16 = vsel %vm623_vm0, %v1291_v3, 0.0  ;;  %v1316_v9 = vmul.f32 %v2617_v63, %v1082_v24  ;;  %v1342_v61 = vsel %vm623_vm0, %v1295_v22, 0.0 }
  0xc4   : > { %v1315_v15 = vmul.f32 %v2616_v58, %v1081_v23  ;;  %v1326_v12 = vadd.f32 %v1325_v36, %v1324_v48  ;;  %v1341_v34 = vadd.f32 %v1340_v16, %v1339_v20  ;;  %v2618_v45 = vcombine.high %v2617_v63, %v2617_v63 }
  0xc5   : > { %v1318_v8 = vmul.f32 %v2619_v53, %v1084_v19  ;;  %v1329_v23 = vsel %vm623_vm0, %v1302_v1, 0.0  ;;  %v1344_v39 = vsel %vm623_vm0, %v1299_v27, 0.0  ;;  %v2620_v21 = vcombine.high %v2619_v53, %v2619_v53 }
  0xc6   : > { %v1317_v33 = vmul.f32 %v2618_v45, %v1083_v18  ;;  %v1328_v29 = vadd.f32 %v1327_v28, %v1326_v12  ;;  %v1343_v24 = vadd.f32 %v1342_v61, %v1341_v34  ;;  %v1356_v42 = vsel %vm623_vm0, %v1288_v13, 0.0 }
  0xc7   : > { %v1319_v3 = vmul.f32 %v2620_v21, %v1085_v59  ;;  %v1331_v22 = vsel %vm623_vm0, %v1306_v25, 0.0  ;;  %v1346_v47 = vsel %vm623_vm0, %v1303_v0, 0.0  ;;  %v1357_v18 = vsel %vm623_vm0, %v1292_v6, 0.0 }
  0xc8   : > { %v1359_v19 = vsel %vm623_vm0, %v1296_v32, 0.0  ;;  %v1330_v10 = vadd.f32 %v1329_v23, %v1328_v29  ;;  %v1333_v1 = vsel %vm623_vm0, %v1310_v38, 0.0  ;;  %v1345_v27 = vadd.f32 %v1344_v39, %v1343_v24 }
  0xc9   : > { %v1358_v17 = vadd.f32 %v1357_v18, %v1356_v42  ;;  %v1335_v54 = vsel %vm623_vm0, %v1314_v26, 0.0  ;;  %v1348_v59 = vsel %vm623_vm0, %v1307_v51, 0.0  ;;  %v1361_v44 = vsel %vm623_vm0, %v1300_v7, 0.0 }
  0xca   : > { %v1373_v13 = vsel %vm623_vm0, %v1289_v52, 0.0  ;;  %v1332_v25 = vadd.f32 %v1331_v22, %v1330_v10  ;;  %v1347_v40 = vadd.f32 %v1346_v47, %v1345_v27  ;;  %v1374_v6 = vsel %vm623_vm0, %v1293_v14, 0.0 }
  0xcb   : > { %v1360_v0 = vadd.f32 %v1359_v19, %v1358_v17  ;;  %v1350_v32 = vsel %vm623_vm0, %v1311_v60, 0.0  ;;  %v1363_v31 = vsel %vm623_vm0, %v1304_v43, 0.0  ;;  %v1375_v38 = vadd.f32 %v1374_v6, %v1373_v13 }
  0xcc   : > { %v1376_v62 = vsel %vm623_vm0, %v1297_v49, 0.0  ;;  %v1334_v41 = vadd.f32 %v1333_v1, %v1332_v25  ;;  %v1349_v11 = vadd.f32 %v1348_v59, %v1347_v40  ;;  %v1378_v51 = vsel %vm623_vm0, %v1301_v5, 0.0  ;;  %v2621_v49 = vld [vmem:[#allocation14_spill] sm:$0xff] }
  0xcd   : > { %v1362_v36 = vadd.f32 %v1361_v44, %v1360_v0  ;;  %v1337_v7 = vsel %vm623_vm0, %v1318_v8, 0.0  ;;  %v1352_v52 = vsel %vm623_vm0, %v1315_v15, 0.0  ;;  %v1365_v4 = vsel %vm623_vm0, %v1308_v50, 0.0 }
  0xce   : > { %v1377_v30 = vadd.f32 %v1376_v62, %v1375_v38  ;;  %v1336_v14 = vadd.f32 %v1335_v54, %v1334_v41  ;;  %v1351_v56 = vadd.f32 %v1350_v32, %v1349_v11  ;;  %v1380_v43 = vsel %vm623_vm0, %v1305_v46, 0.0 }
  0xcf   : > { %v1364_v60 = vadd.f32 %v1363_v31, %v1362_v36  ;;  %v1320_v26 = vmul.f32 %v2621_v49, %v2436_v55  ;;  %v1354_v48 = vsel %vm623_vm0, %v1319_v3, 0.0  ;;  %v1367_v5 = vsel %vm623_vm0, %v1312_v2, 0.0 }
  0xd0   : > { %v1379_v58 = vadd.f32 %v1378_v51, %v1377_v30  ;;  %v1338_v28 = vadd.f32 %v1337_v7, %v1336_v14  ;;  %v1353_v20 = vadd.f32 %v1352_v52, %v1351_v56  ;;  %v1382_v50 = vsel %vm623_vm0, %v2474_v35, 0.0 }
  0xd1   : > { %v1366_v15 = vadd.f32 %v1365_v4, %v1364_v60  ;;  %v1369_v16 = vsel %vm623_vm0, %v1316_v9, 0.0  ;;  %v2622_v46 = vcombine.high %v2621_v49, %v2621_v49  ;;  %v1384_v2 = vsel %vm623_vm0, %v2487_v57, 0.0 }
  0xd2   : > { %v1381_v63 = vadd.f32 %v1380_v43, %v1379_v58  ;;  %v1355_v55 = vadd.f32 %v1354_v48, %v1353_v20  ;;  %v1371_v9 = vsel %vm623_vm0, %v1320_v26, 0.0  ;;  %v1386_v45 = vsel %vm623_vm0, %v1317_v33, 0.0 }
  0xd3   : > { %v1321_v12 = vmul.f32 %v2622_v46, %v2439_v37  ;;  %v1368_v34 = vadd.f32 %v1367_v5, %v1366_v15 }
  0xd4   : > { %v1383_v61 = vadd.f32 %v1382_v50, %v1381_v63  ;;  %v1394_v53 = vcombine.low %v1338_v28, %v1355_v55 }
  0xd5   : > { %v1370_v35 = vadd.f32 %v1369_v16, %v1368_v34  ;;  %v1388_v37 = vsel %vm623_vm0, %v1321_v12, 0.0 }
  0xd6   : > { %v1385_v8 = vadd.f32 %v1384_v2, %v1383_v61  ;;  %1582 = vst.sshfl [vmem:[%s329_s28] sm:$0x33 pattern:$0x76325410] %v1394_v53 }
  0xd7   : > { %v1372_v23 = vadd.f32 %v1371_v9, %v1370_v35 }
  0xd8   : > { %v1387_v39 = vadd.f32 %v1386_v45, %v1385_v8 }
  0xda   : > { %v1389_v21 = vadd.f32 %v1388_v37, %v1387_v39 }
  0xdc   : > { %v1402_v57 = vcombine.low %v1372_v23, %v1389_v21 }
  0xde   : > { %1583 = vst.sshfl [vmem:[%s329_s28 + $0x4] sm:$0x33 pattern:$0x76325410] %v1402_v57 }
  0xdf PF: > { %s14_s17 = sadd.s32 1, %s1716_s17   ;;  %s2623_s15 = smov %s1712_s16 }
  0xe0   : > { %p11_p5 = scmp.ge.s32.totalorder %s14_s17, 4   ;;  %s2624_s16 = smov %s2626_s18 }
  0xe2   :  { %13 = sbr.rel (!%p11_p5) target bundleno = 2 (0x2), region = 75 }

// kernel: bottleneck_forward.13
= control target key start
LH: loop header
LB: loop body
LE: loop exit
PB: predicated region body
PF: predicated region fallthrough
CT: control target
= control target key end

     0   :  { %s943_s12 = smov 0   ;;  %s945_s13 = smov 0   ;;  %s1052_s0 = inlined_call_operand.vmem [shape: bf16[2,2,243,256], index: 0, kind: input, shape index: {}]   ;;  %s1053_s1 = inlined_call_operand.vmem [shape: bf16[2,2,243], index: 1, kind: input, shape index: {}]   ;;  %s1054_s2 = inlined_call_operand.vmem [shape: f32[2,2,2,256], index: 2, kind: input, shape index: {}]   ;;  %s1055_s3 = inlined_call_operand.vmem [shape: f32[2,2,2,256], index: 3, kind: output, shape index: {}]  }
   0x1   :  { %s947_s14 = smov 0   ;;  %s949_s15 = smov 0  }
   0x2   :  { %s951_s16 = smov 0  }
   0x3 LB: > { %s28_s17 = sadd.s32 1, %s910_s14  ;;  %s32_s18 = sadd.s32 1, %s914_s15  ;;  %s918_s16 = sphi %s951_s16, %s13_s16   ;;  %s914_s15 = sphi %s949_s15, %s1059_s15   ;;  %s910_s14 = sphi %s947_s14, %s1058_s14   ;;  %s906_s13 = sphi %s945_s13, %s1057_s13   ;;  %s902_s12 = sphi %s943_s12, %s1056_s12  }
   0x4   : > { %p30_p0 = scmp.ge.s32.totalorder %s28_s17, 2  ;;  %p743_p1 = scmp.ge.s32.totalorder %s918_s16, 1 }
   0x5   : > { %p205_p2 = scmp.lt.s32.totalorder %s918_s16, 5 }
   0x6   : > { %s1061_s17 = smov (%p30_p0, %s28_s17), 0  ;;  %s1063_s18 = smov (!%p30_p0, %s32_s18), %s914_s15 }
   0x7   : > { %p206_p3 = pnand %p743_p1, %p205_p2  ;;  %p34_p4 = scmp.ge.s32.totalorder %s1063_s18, 2 }
   0x8   : > { %p263_p5 = scmp.lt.s32.totalorder (!%p206_p3), %s906_s13, 1  ;;  %p265_p6 = scmp.lt.s32.totalorder (!%p206_p3), %s902_s12, 1  ;;  %v352_v0 = vlaneseq (!%p206_p3)  ;;  %v920_v1 = vmov (!%p206_p3), 1966171168   ;;  %vm519_vm0 = vcmask (!%p206_p3), 941056   ;;  %vm523_vm1 = vcmask (!%p206_p3), 1040384  }
   0x9   : > { %s1065_s18 = smov (%p34_p4, %s1063_s18), 0  ;;  %209 = sbr.rel (%p206_p3) target bundleno = 308 (0x134), region = 32 }
   0xa   : > { %v350_v2 = vunpack.c.l.s4 (!%p206_p3), %v920_v1  ;;  %v973_v3 = vshrl.u32 (!%p206_p3), %v352_v0, 7  ;;  %vm524_vm2 = vcmask (!%p206_p3), 1041408   ;;  %v921_v38 = vmov (!%p206_p3), 65535  }
   0xb   : > { %v525_v39 = vsel (!%p206_p3), %vm523_vm1, 4294967295, %v921_v38  ;;  %v922_v48 = vmov (!%p206_p3), 1983009808  }
   0xc   : > { %v351_v4 = vunpack.c.0.s8 (!%p206_p3), %v350_v2  ;;  %v526_v43 = vsel (!%p206_p3), %vm524_vm2, %v525_v39, 0  ;;  %v579_v49 = vunpack.c.l.s4 (!%p206_p3), %v922_v48 }
   0xe   : > { %v981_v5 = vsub.s32 (!%p206_p3), %v351_v4, %v973_v3  ;;  %v580_v50 = vunpack.c.0.s8 (!%p206_p3), %v579_v49 }
  0x10   : > { %s1067_s13 = smov (!%p263_p5, %s906_s13), 1  ;;  %s1069_s12 = smov (!%p265_p6, %s902_s12), 1  ;;  %v583_v52 = vsub.s32 %v580_v50, %v973_v3 }
  0x11   : > { %s789_s19 = smul.u32 124, %s1067_s13  ;;  %s747_s20 = sshll.u32 %s1067_s13, 2 }
  0x12   : > { %s788_s21 = smul.u32 62, %s1069_s12  ;;  %s745_s22 = sshll.u32 %s1069_s12, 1 }
  0x13   : > { %s279_s25 = scalar_lea.vmem %s1053_s1, %s745_s22  ;;  %s978_s26 = sadd.s32 %s747_s20, %s745_s22 }
  0x14   : > { %s272_s27 = sadd.s32 %s789_s19, %s788_s21  ;;  %v983_v6 = vld.sshfl [vmem:[%s279_s25] sm:$0x11 pattern:$0x75316420]  ;;  %s748_s5 = sshll.u32 %s978_s26, 1 }
  0x15   : > { %s744_s28 = sshll.u32 %s272_s27, 2  ;;  %v348_v7 = vcombine.high %v983_v6, %v983_v6  ;;  %v355_v8 = vrot.slane %v983_v6, %v981_v5  ;;  %s292_s8 = scalar_lea.vmem %s1054_s2, %s748_s5 }
  0x16   : > { %s992_s4 = scalar_lea.vmem %s1052_s0, %s744_s28  ;;  %v574_v56 = vld [vmem:[%s292_s8] sm:$0xf]  ;;  %s306_s11 = scalar_lea.vmem %s1055_s3, %s748_s5 }
  0x17   : > { %v833_v9 = vld [vmem:[%s992_s4 + $0x4] ss:$8 sps:$4 sm:$0xff]   ;;  %v362_v10 = vrot.slane %v348_v7, %v981_v5  ;;  %v835_v11 = vld [vmem:[%s992_s4] ss:$8 sps:$4 sm:$0xff]   ;;  %v836_v12 = vld [vmem:[%s992_s4 + $0x14] ss:$8 sps:$4 sm:$0xff]  }
  0x18   : > { %533 = vmatprep.subr.bf16.mxu0 %v833_v9  ;;  %v838_v13 = vld [vmem:[%s992_s4 + $0x10] ss:$8 sps:$4 sm:$0xff]   ;;  %v839_v14 = vld [vmem:[%s992_s4 + $0x24] ss:$8 sps:$4 sm:$0xff]   ;;  %v841_v15 = vld [vmem:[%s992_s4 + $0x20] ss:$8 sps:$4 sm:$0xff]  }
  0x19   : > { %785 = vmatprep.mubr.msk.bf16.mxu0 %vm519_vm0, %v362_v10  ;;  %534 = vmatpush1.bf16.msra.mxu0 %v835_v11  ;;  %v842_v16 = vld [vmem:[%s992_s4 + $0x34] ss:$8 sps:$4 sm:$0xff]   ;;  %v844_v17 = vld [vmem:[%s992_s4 + $0x30] ss:$8 sps:$4 sm:$0xff]   ;;  %v845_v18 = vld [vmem:[%s992_s4 + $0x44] ss:$8 sps:$4 sm:$0xff]  }
  0x1a   : > { %535 = vmatprep.subr.bf16.mxu0 %v836_v12  ;;  %v847_v19 = vld [vmem:[%s992_s4 + $0x40] ss:$8 sps:$4 sm:$0xff]   ;;  %v848_v20 = vld [vmem:[%s992_s4 + $0x54] ss:$8 sps:$4 sm:$0xff]   ;;  %v850_v21 = vld [vmem:[%s992_s4 + $0x50] ss:$8 sps:$4 sm:$0xff]  }
  0x1b   : > { %v851_v22 = vld [vmem:[%s992_s4 + $0x64] ss:$8 sps:$4 sm:$0xff]   ;;  %v853_v23 = vld [vmem:[%s992_s4 + $0x60] ss:$8 sps:$4 sm:$0xff]   ;;  %v854_v24 = vld [vmem:[%s992_s4 + $0x74] ss:$8 sps:$4 sm:$0xff]  }
  0x1c   : > { %v856_v25 = vld [vmem:[%s992_s4 + $0x70] ss:$8 sps:$4 sm:$0xff]   ;;  %v857_v26 = vld [vmem:[%s992_s4 + $0x84] ss:$8 sps:$4 sm:$0xff]   ;;  %v859_v27 = vld [vmem:[%s992_s4 + $0x80] ss:$8 sps:$4 sm:$0xff]  }
  0x1d   : > { %536 = vmatpush1.bf16.msra.mxu0 %v838_v13  ;;  %v860_v28 = vld [vmem:[%s992_s4 + $0x94] ss:$8 sps:$4 sm:$0xff]   ;;  %v862_v29 = vld [vmem:[%s992_s4 + $0x90] ss:$8 sps:$4 sm:$0xff]   ;;  %v863_v30 = vld [vmem:[%s992_s4 + $0xa4] ss:$8 sps:$4 sm:$0xff]  }
  0x1e   : > { %537 = vmatprep.subr.bf16.mxu0 %v839_v14  ;;  %v865_v31 = vld [vmem:[%s992_s4 + $0xa0] ss:$8 sps:$4 sm:$0xff]   ;;  %v866_v32 = vld [vmem:[%s992_s4 + $0xb4] ss:$8 sps:$4 sm:$0xff]   ;;  %v868_v33 = vld [vmem:[%s992_s4 + $0xb0] ss:$8 sps:$4 sm:$0xff]  }
  0x1f   : > { %v869_v34 = vld [vmem:[%s992_s4 + $0xc4] ss:$8 sps:$4 sm:$0xff]   ;;  %v871_v35 = vld [vmem:[%s992_s4 + $0xc0] ss:$8 sps:$4 sm:$0xff]   ;;  %v872_v36 = vld [vmem:[%s992_s4 + $0xd4] ss:$8 sps:$4 sm:$0xff]  }
  0x20   : > { %v339_v37 = vld [vmem:[%s992_s4 + $0xf0] sm:$0x33]  ;;  %v875_v41 = vld [vmem:[%s992_s4 + $0xe4] ss:$8 sps:$4 sm:$0xff]   ;;  %v877_v44 = vld [vmem:[%s992_s4 + $0xe0] ss:$8 sps:$4 sm:$0xff]  }
  0x21   : > { %538 = vmatpush1.bf16.msra.mxu0 %v841_v15  ;;  %v874_v40 = vld [vmem:[%s992_s4 + $0xd0] ss:$8 sps:$4 sm:$0xff]   ;;  %v784_v42 = vcombine.high %v339_v37, %v339_v37  ;;  %v783_v45 = vcombine.low %v339_v37, %v339_v37 }
  0x22   : > { %539 = vmatprep.subr.bf16.mxu0 %v842_v16 }
  0x23   : > { %v531_v46 = vand.u32 %v784_v42, %v526_v43  ;;  %v528_v47 = vand.u32 %v783_v45, %v526_v43 }
  0x25   : > { %540 = vmatpush1.bf16.msra.mxu0 %v844_v17 }
  0x26   : > { %541 = vmatprep.subr.bf16.mxu0 %v845_v18 }
  0x29   : > { %542 = vmatpush1.bf16.msra.mxu0 %v847_v19 }
  0x2a   : > { %543 = vmatprep.subr.bf16.mxu0 %v848_v20 }
  0x2d   : > { %544 = vmatpush1.bf16.msra.mxu0 %v850_v21 }
  0x2e   : > { %545 = vmatprep.subr.bf16.mxu0 %v851_v22 }
  0x31   : > { %546 = vmatpush1.bf16.msra.mxu0 %v853_v23 }
  0x32   : > { %547 = vmatprep.subr.bf16.mxu0 %v854_v24 }
  0x35   : > { %548 = vmatpush1.bf16.msra.mxu0 %v856_v25 }
  0x36   : > { %549 = vmatprep.subr.bf16.mxu0 %v857_v26 }
  0x39   : > { %550 = vmatpush1.bf16.msra.mxu0 %v859_v27 }
  0x3a   : > { %551 = vmatprep.subr.bf16.mxu0 %v860_v28 }
  0x3d   : > { %552 = vmatpush1.bf16.msra.mxu0 %v862_v29 }
  0x3e   : > { %553 = vmatprep.subr.bf16.mxu0 %v863_v30 }
  0x41   : > { %554 = vmatpush1.bf16.msra.mxu0 %v865_v31 }
  0x42   : > { %555 = vmatprep.subr.bf16.mxu0 %v866_v32 }
  0x45   : > { %556 = vmatpush1.bf16.msra.mxu0 %v868_v33 }
  0x46   : > { %557 = vmatprep.subr.bf16.mxu0 %v869_v34 }
  0x49   : > { %558 = vmatpush1.bf16.msra.mxu0 %v871_v35 }
  0x4a   : > { %559 = vmatprep.subr.bf16.mxu0 %v872_v36 }
  0x4d   : > { %560 = vmatpush1.bf16.msra.mxu0 %v874_v40 }
  0x4e   : > { %561 = vmatprep.subr.bf16.mxu0 %v875_v41 }
  0x51   : > { %562 = vmatpush1.bf16.msra.mxu0 %v877_v44 }
  0x52   : > { %563 = vmatprep.subr.bf16.mxu0 %v531_v46 }
  0x55   : > { %564 = vmatpush1.bf16.msra.mxu0 %v528_v47 }
  0x58   : > { %566 = vmatmul.mubr.bf16.vlgmr.msra.gmra.mrb[0].mxu0 %v355_v8 }
 0x12b   : > { %v567_v51 = vpop.f32.mrb[0].mxu0 }
 0x12c   : > { %v569_v53 = vpop.f32.mrb[1].mxu0 }
 0x12d   : > { %v577_v54 = vcombine.low %v567_v51, %v569_v53  ;;  %v571_v55 = vpop.f32.mrb[2].mxu0 }
 0x12e   : > { %v572_v57 = vpop.f32.mrb[3].mxu0 }
 0x12f   : > { %v584_v58 = vrot.slane %v577_v54, %v583_v52 }
 0x131   : > { %v586_v59 = vadd.f32 %v584_v58, %v574_v56 }
 0x133   : > { %587 = vst [vmem:[%s306_s11] sm:$0xf] %v586_v59 }
 0x134 PF: > { %s13_s16 = sadd.s32 1, %s918_s16   ;;  %s1056_s12 = smov %s910_s14 }
 0x135   : > { %p10_p7 = scmp.ge.s32.totalorder %s13_s16, 6   ;;  %s1057_s13 = smov %s914_s15 }
 0x136   : > { %s1058_s14 = smov %s1061_s17  ;;  %s1059_s15 = smov %s1065_s18 }
 0x137   :  { %12 = sbr.rel (!%p10_p7) target bundleno = 3 (0x3), region = 68 }

// kernel: bottleneck_forward.14
= control target key start
LH: loop header
LB: loop body
LE: loop exit
PB: predicated region body
PF: predicated region fallthrough
CT: control target
= control target key end

     0   :  { %s566_s18 = smov 0   ;;  %s568_s19 = smov 0   ;;  %s618_s0 = inlined_call_operand.vmem [shape: bf16[2,4,256], index: 0, kind: input, shape index: {}]   ;;  %s619_s1 = inlined_call_operand.vmem [shape: bf16[16,4], index: 1, kind: input, shape index: {}]   ;;  %s620_s2 = inlined_call_operand.vmem [shape: f32[16,1], index: 2, kind: input, shape index: {}]   ;;  %s621_s3 = inlined_call_operand.vmem [shape: f32[4,1], index: 3, kind: input, shape index: {}]   ;;  %s622_s4 = inlined_call_operand.vmem [shape: f32[4,1], index: 4, kind: input, shape index: {}]   ;;  %s623_s5 = inlined_call_operand.vmem [shape: f32[2,16,256], index: 5, kind: output, shape index: {}]  }
   0x1   :  { %s570_s20 = smov 0  }
   0x2 LB: > { %s27_s21 = sadd.s32 1, %s528_s19  ;;  %p469_p0 = scmp.ge.s32.totalorder %s532_s20, 1  ;;  %s532_s20 = sphi %s570_s20, %s15_s20   ;;  %s528_s19 = sphi %s568_s19, %s625_s19   ;;  %s524_s18 = sphi %s566_s18, %s624_s18  }
   0x3   : > { %p29_p1 = scmp.ge.s32.totalorder %s27_s21, 2  ;;  %p208_p2 = scmp.lt.s32.totalorder %s532_s20, 3 }
   0x5   : > { %s627_s21 = smov (%p29_p1, %s27_s21), 0  ;;  %p209_p3 = pnand %p469_p0, %p208_p2 }
   0x6   : > { %v267_v0 = vld [vmem:[%s621_s3] sm:$0xf] (!%p209_p3)  ;;  %v534_v1 = vmov (!%p209_p3), 0   ;;  %v304_v4 = vld [vmem:[%s620_s2 + $0x8] sm:$0xff] (!%p209_p3)  ;;  %p245_p4 = scmp.lt.s32.totalorder (!%p209_p3), %s524_s18, 1  ;;  %v275_v7 = vlaneseq (!%p209_p3)  ;;  %vm324_vm0 = vcmask (!%p209_p3), 1041408  }
   0x7   : > { %212 = sbr.rel (%p209_p3) target bundleno = 372 (0x174), region = 40  ;;  %507 = vset.pattern.permute.xlu0 (!%p209_p3), %v534_v1  ;;  %363 = vmatprep.mubr.bf16.mxu0 (!%p209_p3), %v534_v1  ;;  %v281_v2 = vld [vmem:[%s622_s4] sm:$0xf] (!%p209_p3)  ;;  %v535_v5 = vmov (!%p209_p3), 839922192   ;;  %vm320_vm1 = vcmask (!%p209_p3), 31744  }
   0x8   : > { %270 = vperm.xlu0 (!%p209_p3), %507, %v267_v0   ;;  %508 = vset.pattern.permute.xlu1 (!%p209_p3), %v534_v1  ;;  %v303_v3 = vld [vmem:[%s620_s2] sm:$0xff] (!%p209_p3)  ;;  %v273_v6 = vunpack.c.l.s4 (!%p209_p3), %v535_v5  ;;  %v276_v9 = vshrl.u32 (!%p209_p3), %v275_v7, 7 }
   0x9   : > { %307 = vperm.xlu1 (!%p209_p3), %508, %v303_v3   ;;  %v509_v24 = vld [vmem:[%s619_s1] sm:$0xff] (!%p209_p3)  }
   0xa   : > { %v274_v8 = vunpack.c.0.s8 (!%p209_p3), %v273_v6 }
   0xc   : > { %284 = vperm.xlu0 (!%p209_p3), %507, %v281_v2   ;;  %v277_v10 = vsub.s32 (!%p209_p3), %v274_v8, %v276_v9 }
   0xd   : > { %312 = vperm.xlu1 (!%p209_p3), %508, %v304_v4  }
   0xe   : > { %s629_s18 = smov (!%p245_p4, %s524_s18), 1 }
   0xf   : > { %s479_s30 = sshll.u32 %s629_s18, 2  ;;  %s480_s11 = sshll.u32 %s629_s18, 5 }
  0x10   : > { %s252_s8 = scalar_lea.vmem %s618_s0, %s479_s30  ;;  %s262_s14 = scalar_lea.vmem %s623_s5, %s480_s11 }
  0x11   : > { %v265_v11 = vld [vmem:[%s252_s8] sm:$0xf] }
  0x12   : > { %v266_v13 = vunpack.c.l.bf16 %v265_v11 }
  0x87   : > { %v271_v12 = vpop.permute.xlu0 %270 }
  0x88   : > { %v278_v14 = vrot.slane %v271_v12, %v277_v10  ;;  %v308_v25 = vpop.permute.xlu1 %307 }
  0x8a   : > { %v280_v16 = vmul.f32 %v278_v14, %v266_v13 }
  0x8b   : > { %v285_v15 = vpop.permute.xlu0 %284 }
  0x8c   : > { %v292_v17 = vrot.slane %v285_v15, %v277_v10  ;;  %v313_v29 = vpop.permute.xlu1 %312 }
  0x8e   : > { %v294_v18 = vadd.f32 %v292_v17, %v280_v16 }
  0x90   : > { %v295_v19 = vmax.f32 %v294_v18, 0.0 }
  0x92   : > { %v297_v20 = vcombine.high %v295_v19, %v295_v19  ;;  %v299_v21 = vpack.c.bf16 %v295_v19, %v295_v19 }
  0x94   : > { %v300_v22 = vpack.c.bf16 %v297_v20, %v297_v20  ;;  %v326_v23 = vsel %vm324_vm0, %v299_v21, 0 }
  0x96   : > { %475 = vmatprep.subr.msk.bf16.mxu0 %vm324_vm0, %v300_v22 }
  0x97   : > { %332 = vmatpush1.bf16.msra.mxu0 %v326_v23 }
  0x9a   : > { %476 = vmatmul.mubr.msk.bf16.vlgmr.msra.gmra.mrb[0].mxu0 %vm320_vm1, %v509_v24 }
 0x16d   : > { %v365_v26 = vpop.f32.mrb[0].mxu0 }
 0x16e   : > { %v366_v27 = vadd.f32 %v365_v26, %v308_v25  ;;  %v367_v28 = vpop.f32.mrb[1].mxu0 }
 0x16f   : > { %v368_v30 = vadd.f32 %v367_v28, %v308_v25  ;;  %v369_v31 = vpop.f32.mrb[2].mxu0 }
 0x170   : > { %374 = vst [vmem:[%s262_s14] sm:$0xff] %v366_v27  ;;  %v370_v32 = vadd.f32 %v369_v31, %v313_v29  ;;  %v371_v33 = vpop.f32.mrb[3].mxu0 }
 0x171   : > { %375 = vst [vmem:[%s262_s14 + $0x8] sm:$0xff] %v368_v30  ;;  %v372_v34 = vadd.f32 %v371_v33, %v313_v29 }
 0x172   : > { %376 = vst [vmem:[%s262_s14 + $0x10] sm:$0xff] %v370_v32 }
 0x173   : > { %377 = vst [vmem:[%s262_s14 + $0x18] sm:$0xff] %v372_v34 }
 0x174 PF: > { %s15_s20 = sadd.s32 1, %s532_s20   ;;  %s624_s18 = smov %s528_s19 }
 0x175   : > { %p12_p5 = scmp.ge.s32.totalorder %s15_s20, 4   ;;  %s625_s19 = smov %s627_s21 }
 0x177   :  { %14 = sbr.rel (!%p12_p5) target bundleno = 2 (0x2), region = 70 }

// kernel: bottleneck_forward.15
= control target key start
LH: loop header
LB: loop body
LE: loop exit
PB: predicated region body
PF: predicated region fallthrough
CT: control target
= control target key end

     0   :  { %s523_s15 = smov 0   ;;  %s525_s16 = smov 0   ;;  %s571_s0 = inlined_call_operand.vmem [shape: f32[2,16,256], index: 0, kind: input, shape index: {}]   ;;  %s572_s1 = inlined_call_operand.vmem [shape: f32[2,16,256], index: 1, kind: input, shape index: {}]   ;;  %s573_s2 = inlined_call_operand.vmem [shape: f32[16,1], index: 2, kind: input, shape index: {}]   ;;  %s574_s3 = inlined_call_operand.vmem [shape: f32[16,1], index: 3, kind: input, shape index: {}]   ;;  %s575_s4 = inlined_call_operand.vmem [shape: f32[2,16,256], index: 4, kind: output, shape index: {}]  }
   0x1   :  { %s527_s17 = smov 0  }
   0x2 LB: > { %s26_s18 = sadd.s32 1, %s491_s16  ;;  %p434_p0 = scmp.ge.s32.totalorder %s495_s17, 1  ;;  %s495_s17 = sphi %s527_s17, %s14_s17   ;;  %s491_s16 = sphi %s525_s16, %s577_s16   ;;  %s487_s15 = sphi %s523_s15, %s576_s15  }
   0x3   : > { %p28_p1 = scmp.ge.s32.totalorder %s26_s18, 2  ;;  %p200_p2 = scmp.lt.s32.totalorder %s495_s17, 3 }
   0x5   : > { %s579_s18 = smov (%p28_p1, %s26_s18), 0  ;;  %p201_p3 = pnand %p434_p0, %p200_p2 }
   0x6   : > { %v293_v0 = vld [vmem:[%s574_s3] sm:$0xff] (!%p201_p3)  ;;  %v497_v2 = vmov (!%p201_p3), 0   ;;  %v294_v3 = vld [vmem:[%s574_s3 + $0x8] sm:$0xff] (!%p201_p3)  ;;  %p244_p4 = scmp.lt.s32.totalorder (!%p201_p3), %s487_s15, 1 }
   0x7   : > { %204 = sbr.rel (%p201_p3) target bundleno = 149 (0x95), region = 36  ;;  %v277_v1 = vld [vmem:[%s573_s2] sm:$0xff] (!%p201_p3)  ;;  %472 = vset.pattern.permute.xlu1 (!%p201_p3), %v497_v2  ;;  %471 = vset.pattern.permute.xlu0 (!%p201_p3), %v497_v2  ;;  %v278_v4 = vld [vmem:[%s573_s2 + $0x8] sm:$0xff] (!%p201_p3) }
   0x8   : > { %297 = vperm.xlu1 (!%p201_p3), %472, %v293_v0   ;;  %281 = vperm.xlu0 (!%p201_p3), %471, %v277_v1  }
   0xc   : > { %302 = vperm.xlu1 (!%p201_p3), %472, %v294_v3   ;;  %286 = vperm.xlu0 (!%p201_p3), %471, %v278_v4  }
   0xe   : > { %s581_s15 = smov (!%p244_p4, %s487_s15), 1 }
   0xf   : > { %s443_s27 = sshll.u32 %s581_s15, 5 }
  0x10   : > { %s251_s30 = scalar_lea.vmem %s571_s0, %s443_s27  ;;  %s261_s7 = scalar_lea.vmem %s572_s1, %s443_s27 }
  0x11   : > { %v273_v5 = vld [vmem:[%s251_s30] sm:$0xff]  ;;  %v274_v6 = vld [vmem:[%s251_s30 + $0x8] sm:$0xff]  ;;  %v275_v13 = vld [vmem:[%s251_s30 + $0x10] sm:$0xff]  ;;  %s271_s10 = scalar_lea.vmem %s575_s4, %s443_s27 }
  0x12   : > { %v309_v11 = vld [vmem:[%s261_s7] sm:$0xff]  ;;  %v310_v12 = vld [vmem:[%s261_s7 + $0x8] sm:$0xff]  ;;  %v276_v14 = vld [vmem:[%s251_s30 + $0x18] sm:$0xff] }
  0x13   : > { %v311_v23 = vld [vmem:[%s261_s7 + $0x10] sm:$0xff]  ;;  %v312_v24 = vld [vmem:[%s261_s7 + $0x18] sm:$0xff] }
  0x87   : > { %v298_v7 = vpop.permute.xlu1 %297  ;;  %v282_v8 = vpop.permute.xlu0 %281 }
  0x88   : > { %v289_v9 = vmul.f32 %v282_v8, %v273_v5  ;;  %v290_v10 = vmul.f32 %v282_v8, %v274_v6 }
  0x8a   : > { %v305_v15 = vadd.f32 %v298_v7, %v289_v9  ;;  %v306_v16 = vadd.f32 %v298_v7, %v290_v10 }
  0x8b   : > { %v287_v17 = vpop.permute.xlu0 %286  ;;  %v303_v22 = vpop.permute.xlu1 %302 }
  0x8c   : > { %v313_v18 = vadd.f32 %v309_v11, %v305_v15  ;;  %v314_v19 = vadd.f32 %v310_v12, %v306_v16  ;;  %v291_v20 = vmul.f32 %v287_v17, %v275_v13  ;;  %v292_v21 = vmul.f32 %v287_v17, %v276_v14 }
  0x8e   : > { %v317_v25 = vmax.f32 %v313_v18, 0.0  ;;  %v318_v26 = vmax.f32 %v314_v19, 0.0  ;;  %v307_v27 = vadd.f32 %v303_v22, %v291_v20  ;;  %v308_v28 = vadd.f32 %v303_v22, %v292_v21 }
  0x90   : > { %321 = vst [vmem:[%s271_s10] sm:$0xff] %v317_v25  ;;  %322 = vst [vmem:[%s271_s10 + $0x8] sm:$0xff] %v318_v26  ;;  %v315_v29 = vadd.f32 %v311_v23, %v307_v27  ;;  %v316_v30 = vadd.f32 %v312_v24, %v308_v28 }
  0x92   : > { %v319_v31 = vmax.f32 %v315_v29, 0.0  ;;  %v320_v32 = vmax.f32 %v316_v30, 0.0 }
  0x94   : > { %323 = vst [vmem:[%s271_s10 + $0x10] sm:$0xff] %v319_v31  ;;  %324 = vst [vmem:[%s271_s10 + $0x18] sm:$0xff] %v320_v32 }
  0x95 PF: > { %s14_s17 = sadd.s32 1, %s495_s17   ;;  %s576_s15 = smov %s491_s16 }
  0x96   : > { %p11_p5 = scmp.ge.s32.totalorder %s14_s17, 4   ;;  %s577_s16 = smov %s579_s18 }
  0x98   :  { %13 = sbr.rel (!%p11_p5) target bundleno = 2 (0x2), region = 69 }

</bundles_post_ra>
